<compile_context>
chip_gen: v5e
topology: v5e:2x2
jax: 0.10.0
libtpu: 0.0.40
codegen_flags: <defaults>
</compile_context>

<pallas_src>
import math

import jax
import jax.numpy as jnp
from jax.experimental import pallas as pl
from jax.experimental.pallas import tpu as pltpu


def _make_conv_kernel(offsets, fold, TM, TSUB, HB, CIN, COUT):
    """offsets: static flat-column offset of every kernel tap, all in [0, 2*HALO]."""
    KVOL = len(offsets)
    G = KVOL // fold              # number of folded tap groups (dots per sub-tile)
    n_sub = TM // TSUB

    def kernel(x_cur_ref, x_halo_ref, w_ref, o_ref, xwin_ref, xcat_ref):
        # Window = current tile + right halo.  Only CIN rows -> a few vregs per grid step.
        xwin_ref[:, pl.ds(0, TM)] = x_cur_ref[...].astype(jnp.float32)
        xwin_ref[:, pl.ds(TM, HB)] = x_halo_ref[...].astype(jnp.float32)

        for sub in range(n_sub):                      # short static unroll
            r0 = sub * TSUB
            acc = None
            for g in range(G):
                # Pack `fold` shifted (CIN, TSUB) slices densely along the contraction
                # axis (static row offsets f*CIN, static column offsets r0+s).
                for f in range(fold):
                    s = offsets[g * fold + f]
                    xcat_ref[pl.ds(f * CIN, CIN), :] = xwin_ref[:, pl.ds(r0 + s, TSUB)]
                part = jnp.dot(w_ref[g], xcat_ref[...],
                               preferred_element_type=jnp.float32)
                acc = part if acc is None else acc + part
            o_ref[:, pl.ds(r0, TSUB)] = acc.astype(o_ref.dtype)

    return kernel


def conv3d_same(x_ncdhw, weight, *, stride=1, stream_dtype=jnp.bfloat16,
                out_dtype=None, max_fold_k=128):
    """nn.Conv3d(..., padding='same', stride=1, bias=False) forward.

    x_ncdhw: (N, Cin, D, H, W)   -- PyTorch layout (kept; it is channel-major already)
    weight : (Cout, Cin, KD, KH, KW)
    returns: (N, Cout, D, H, W)
    """
    assert stride == 1, "RSUNet.Conv default stride=1 ('same' padding)"
    N, CIN, D, H, W = x_ncdhw.shape
    COUT, CIN2, KD, KH, KW = weight.shape
    assert CIN == CIN2
    assert KD % 2 and KH % 2 and KW % 2, "'same' padding requires odd kernel"
    out_dtype = x_ncdhw.dtype if out_dtype is None else out_dtype

    pd, ph, pw = KD // 2, KH // 2, KW // 2
    Dp, Hp, Wp = D + 2 * pd, H + 2 * ph, W + 2 * pw
    Mp = Dp * Hp * Wp                              # flat padded spatial length per sample
    KVOL = KD * KH * KW

    # Flat-column offset of each kernel tap relative to an output position.
    HALO = pd * Hp * Wp + ph * Wp + pw
    offsets = [kd * Hp * Wp + kh * Wp + kw
               for kd in range(KD) for kh in range(KH) for kw in range(KW)]

    # Tap-fold factor: fold the largest contiguous tap group whose folded contraction
    # still fits max_fold_k (128 is safe on v5e; use 256 on v6e/v7x).
    fold = 1
    for cand in (KVOL, KH * KW, KW):
        if cand * CIN <= max_fold_k:
            fold = cand
            break
    G = KVOL // fold
    Kf = fold * CIN

    # Column tiling of the flat padded spatial axis (per sample).
    TSUB = 256
    HB = TSUB * max(1, -(-2 * HALO // TSUB))       # halo block: >= 2*HALO, multiple of TSUB
    TARGET_TM = 2048
    need = -(-Mp // HB)                            # blocks needed to cover one sample
    blocks = max(1, min(max(1, TARGET_TM // HB), -(-need // 2)))   # keep >=2 tiles if possible
    TM = HB * blocks                               # row-tile width (multiple of HB and TSUB)
    T = -(-Mp // TM)                               # tiles per sample
    S_ext = T * TM + HB                            # extended flat length incl. halo/pad

    # ---- wrapper glue: cast + pad only (NO transposes) ----
    xq = x_ncdhw.astype(stream_dtype)
    xq = jnp.pad(xq, ((0, 0), (0, 0), (pd, pd), (ph, ph), (pw, pw)))
    xq = xq.reshape(N, CIN, Mp)
    xe = jnp.pad(xq, ((0, 0), (0, 0), (HALO, S_ext - Mp - HALO)))   # (N, CIN, S_ext)

    # Folded weights: w_fold[g, o, f*CIN + c] = weight[o, c, tap g*fold+f].
    wt = jnp.transpose(weight, (2, 3, 4, 0, 1)).reshape(G, fold, COUT, CIN)
    w_fold = jnp.transpose(wt, (0, 2, 1, 3)).reshape(G, COUT, Kf).astype(jnp.float32)

    kernel = _make_conv_kernel(offsets, fold, TM, TSUB, HB, CIN, COUT)
    out_flat = pl.pallas_call(
        kernel,
        out_shape=jax.ShapeDtypeStruct((N, COUT, T * TM), out_dtype),
        grid_spec=pltpu.PrefetchScalarGridSpec(
            num_scalar_prefetch=0,
            grid=(N, T),
            in_specs=[
                # current column tile of this sample
                pl.BlockSpec((None, CIN, TM), lambda n, t: (n, 0, t)),
                # right halo: only HB columns (not a whole second tile); TM % HB == 0
                pl.BlockSpec((None, CIN, HB),
                             lambda n, t: (n, 0, (t + 1) * (TM // HB))),
                # folded weights: constant index -> VMEM resident
                pl.BlockSpec((G, COUT, Kf), lambda n, t: (0, 0, 0)),
            ],
            out_specs=pl.BlockSpec((None, COUT, TM), lambda n, t: (n, 0, t)),
            scratch_shapes=[
                pltpu.VMEM((CIN, TM + HB), jnp.float32),   # halo'd window (f32)
                pltpu.VMEM((Kf, TSUB), jnp.float32),       # folded LHS for the MXU
            ],
        ),
        compiler_params=pltpu.CompilerParams(
            dimension_semantics=("parallel", "parallel"),
        ),
    )(xe, xe, w_fold)

    out = out_flat[:, :, :Mp].reshape(N, COUT, Dp, Hp, Wp)
    return out[:, :, pd:pd + D, ph:ph + H, pw:pw + W]


if __name__ == "__main__":
    key = jax.random.PRNGKey(0)
    N, CIN, COUT = 2, 4, 8
    D = H = W = 8
    KD = KH = KW = 3

    kx, kw_ = jax.random.split(key)
    x = jax.random.normal(kx, (N, CIN, D, H, W), dtype=jnp.float32)

    # Deterministic kaiming_normal_ (nonlinearity='relu', fan_in mode): std = sqrt(2/fan_in)
    fan_in = CIN * KD * KH * KW
    std = math.sqrt(2.0 / fan_in)
    weight = std * jax.random.normal(kw_, (COUT, CIN, KD, KH, KW), dtype=jnp.float32)

    dn = ("NCDHW", "OIDHW", "NCDHW")

    # f32-streamed path vs XLA conv (same semantics as nn.Conv3d 'same', no bias).
    out_f32 = jax.block_until_ready(conv3d_same(x, weight, stream_dtype=jnp.float32))
    ref = jax.lax.conv_general_dilated(
        x, weight, window_strides=(1, 1, 1), padding="SAME", dimension_numbers=dn,
        precision=jax.lax.Precision.HIGHEST)
    assert out_f32.shape == ref.shape == (N, COUT, D, H, W)
    err = float(jnp.max(jnp.abs(out_f32 - ref)))
    assert err < 5e-2, f"f32 path max abs err = {err}"

    # bf16-streamed (default) path: compare against conv on bf16-rounded activations.
    out_bf16 = jax.block_until_ready(conv3d_same(x, weight))
    xr = x.astype(jnp.bfloat16).astype(jnp.float32)
    ref_bf = jax.lax.conv_general_dilated(
        xr, weight, window_strides=(1, 1, 1), padding="SAME", dimension_numbers=dn,
        precision=jax.lax.Precision.HIGHEST)
    assert out_bf16.shape == ref_bf.shape
    err_bf = float(jnp.max(jnp.abs(out_bf16 - ref_bf)))
    assert err_bf < 5e-2, f"bf16 path max abs err = {err_bf}"

    print("KERNEL_OK")
</pallas_src>

<mosaic_0001>
module attributes {stable_mosaic.version = 11 : i64} {
  func.func @kernel(%arg0: i32, %arg1: i32, %arg2: memref<1x4x512xf32, #tpu.memory_space<vmem>>, %arg3: memref<1x4x256xf32, #tpu.memory_space<vmem>>, %arg4: memref<1x8x108xf32, #tpu.memory_space<vmem>>, %arg5: memref<1x8x512xf32, #tpu.memory_space<vmem>>, %arg6: memref<4x768xf32, #tpu.memory_space<vmem>>, %arg7: memref<108x256xf32, #tpu.memory_space<vmem>>) attributes {dimension_semantics = [#tpu.dimension_semantics<parallel>, #tpu.dimension_semantics<parallel>], iteration_bounds = array<i64: 2, 2>, scalar_prefetch = 0 : i64, scratch_operands = 2 : i64, tpu.core_type = #tpu.core_type<tc>, window_params = [{transform_indices = @transform_0, window_bounds = array<i64: 1, 4, 512>}, {transform_indices = @transform_1, window_bounds = array<i64: 1, 4, 256>}, {pipeline_mode = #tpu.pipeline_mode<synchronous>, transform_indices = @transform_2, window_bounds = array<i64: 1, 8, 108>}, {transform_indices = @transform_3, window_bounds = array<i64: 1, 8, 512>}]} {
    %c0 = arith.constant 0 : index
    %c0_0 = arith.constant 0 : index
    %c0_1 = arith.constant 0 : index
    %0 = vector.load %arg2[%c0, %c0_0, %c0_1] : memref<1x4x512xf32, #tpu.memory_space<vmem>>, vector<1x4x512xf32>
    %1 = vector.shape_cast %0 : vector<1x4x512xf32> to vector<4x512xf32>
    %c0_2 = arith.constant 0 : index
    %c0_3 = arith.constant 0 : index
    %2 = vector.load %arg6[%c0_2, %c0_3] : memref<4x768xf32, #tpu.memory_space<vmem>>, vector<4x512xf32>
    tpu.vector_store %arg6[%c0_2, %c0_3], %1 {strides = array<i32>} : memref<4x768xf32, #tpu.memory_space<vmem>>, vector<4x512xf32>,
    %c0_4 = arith.constant 0 : index
    %c0_5 = arith.constant 0 : index
    %c0_6 = arith.constant 0 : index
    %3 = vector.load %arg3[%c0_4, %c0_5, %c0_6] : memref<1x4x256xf32, #tpu.memory_space<vmem>>, vector<1x4x256xf32>
    %4 = vector.shape_cast %3 : vector<1x4x256xf32> to vector<4x256xf32>
    %c0_7 = arith.constant 0 : index
    %c512 = arith.constant 512 : index
    %5 = vector.load %arg6[%c0_7, %c512] : memref<4x768xf32, #tpu.memory_space<vmem>>, vector<4x256xf32>
    tpu.vector_store %arg6[%c0_7, %c512], %4 {strides = array<i32>} : memref<4x768xf32, #tpu.memory_space<vmem>>, vector<4x256xf32>,
    %c0_8 = arith.constant 0 : index
    %c0_9 = arith.constant 0 : index
    %6 = vector.load %arg6[%c0_8, %c0_9] : memref<4x768xf32, #tpu.memory_space<vmem>>, vector<4x256xf32>
    %c0_10 = arith.constant 0 : index
    %c0_11 = arith.constant 0 : index
    %7 = vector.load %arg7[%c0_10, %c0_11] : memref<108x256xf32, #tpu.memory_space<vmem>>, vector<4x256xf32>
    tpu.vector_store %arg7[%c0_10, %c0_11], %6 {strides = array<i32>} : memref<108x256xf32, #tpu.memory_space<vmem>>, vector<4x256xf32>,
    %c0_12 = arith.constant 0 : index
    %c1 = arith.constant 1 : index
    %8 = vector.load %arg6[%c0_12, %c1] : memref<4x768xf32, #tpu.memory_space<vmem>>, vector<4x256xf32>
    %c4 = arith.constant 4 : index
    %c0_13 = arith.constant 0 : index
    %9 = vector.load %arg7[%c4, %c0_13] : memref<108x256xf32, #tpu.memory_space<vmem>>, vector<4x256xf32>
    tpu.vector_store %arg7[%c4, %c0_13], %8 {strides = array<i32>} : memref<108x256xf32, #tpu.memory_space<vmem>>, vector<4x256xf32>,
    %c0_14 = arith.constant 0 : index
    %c2 = arith.constant 2 : index
    %10 = vector.load %arg6[%c0_14, %c2] : memref<4x768xf32, #tpu.memory_space<vmem>>, vector<4x256xf32>
    %c8 = arith.constant 8 : index
    %c0_15 = arith.constant 0 : index
    %11 = vector.load %arg7[%c8, %c0_15] : memref<108x256xf32, #tpu.memory_space<vmem>>, vector<4x256xf32>
    tpu.vector_store %arg7[%c8, %c0_15], %10 {strides = array<i32>} : memref<108x256xf32, #tpu.memory_space<vmem>>, vector<4x256xf32>,
    %c0_16 = arith.constant 0 : index
    %c10 = arith.constant 10 : index
    %12 = vector.load %arg6[%c0_16, %c10] : memref<4x768xf32, #tpu.memory_space<vmem>>, vector<4x256xf32>
    %c12 = arith.constant 12 : index
    %c0_17 = arith.constant 0 : index
    %13 = vector.load %arg7[%c12, %c0_17] : memref<108x256xf32, #tpu.memory_space<vmem>>, vector<4x256xf32>
    tpu.vector_store %arg7[%c12, %c0_17], %12 {strides = array<i32>} : memref<108x256xf32, #tpu.memory_space<vmem>>, vector<4x256xf32>,
    %c0_18 = arith.constant 0 : index
    %c11 = arith.constant 11 : index
    %14 = vector.load %arg6[%c0_18, %c11] : memref<4x768xf32, #tpu.memory_space<vmem>>, vector<4x256xf32>
    %c16 = arith.constant 16 : index
    %c0_19 = arith.constant 0 : index
    %15 = vector.load %arg7[%c16, %c0_19] : memref<108x256xf32, #tpu.memory_space<vmem>>, vector<4x256xf32>
    tpu.vector_store %arg7[%c16, %c0_19], %14 {strides = array<i32>} : memref<108x256xf32, #tpu.memory_space<vmem>>, vector<4x256xf32>,
    %c0_20 = arith.constant 0 : index
    %c12_21 = arith.constant 12 : index
    %16 = vector.load %arg6[%c0_20, %c12_21] : memref<4x768xf32, #tpu.memory_space<vmem>>, vector<4x256xf32>
    %c20 = arith.constant 20 : index
    %c0_22 = arith.constant 0 : index
    %17 = vector.load %arg7[%c20, %c0_22] : memref<108x256xf32, #tpu.memory_space<vmem>>, vector<4x256xf32>
    tpu.vector_store %arg7[%c20, %c0_22], %16 {strides = array<i32>} : memref<108x256xf32, #tpu.memory_space<vmem>>, vector<4x256xf32>,
    %c0_23 = arith.constant 0 : index
    %c20_24 = arith.constant 20 : index
    %18 = vector.load %arg6[%c0_23, %c20_24] : memref<4x768xf32, #tpu.memory_space<vmem>>, vector<4x256xf32>
    %c24 = arith.constant 24 : index
    %c0_25 = arith.constant 0 : index
    %19 = vector.load %arg7[%c24, %c0_25] : memref<108x256xf32, #tpu.memory_space<vmem>>, vector<4x256xf32>
    tpu.vector_store %arg7[%c24, %c0_25], %18 {strides = array<i32>} : memref<108x256xf32, #tpu.memory_space<vmem>>, vector<4x256xf32>,
    %c0_26 = arith.constant 0 : index
    %c21 = arith.constant 21 : index
    %20 = vector.load %arg6[%c0_26, %c21] : memref<4x768xf32, #tpu.memory_space<vmem>>, vector<4x256xf32>
    %c28 = arith.constant 28 : index
    %c0_27 = arith.constant 0 : index
    %21 = vector.load %arg7[%c28, %c0_27] : memref<108x256xf32, #tpu.memory_space<vmem>>, vector<4x256xf32>
    tpu.vector_store %arg7[%c28, %c0_27], %20 {strides = array<i32>} : memref<108x256xf32, #tpu.memory_space<vmem>>, vector<4x256xf32>,
    %c0_28 = arith.constant 0 : index
    %c22 = arith.constant 22 : index
    %22 = vector.load %arg6[%c0_28, %c22] : memref<4x768xf32, #tpu.memory_space<vmem>>, vector<4x256xf32>
    %c32 = arith.constant 32 : index
    %c0_29 = arith.constant 0 : index
    %23 = vector.load %arg7[%c32, %c0_29] : memref<108x256xf32, #tpu.memory_space<vmem>>, vector<4x256xf32>
    tpu.vector_store %arg7[%c32, %c0_29], %22 {strides = array<i32>} : memref<108x256xf32, #tpu.memory_space<vmem>>, vector<4x256xf32>,
    %c0_30 = arith.constant 0 : index
    %c100 = arith.constant 100 : index
    %24 = vector.load %arg6[%c0_30, %c100] : memref<4x768xf32, #tpu.memory_space<vmem>>, vector<4x256xf32>
    %c36 = arith.constant 36 : index
    %c0_31 = arith.constant 0 : index
    %25 = vector.load %arg7[%c36, %c0_31] : memref<108x256xf32, #tpu.memory_space<vmem>>, vector<4x256xf32>
    tpu.vector_store %arg7[%c36, %c0_31], %24 {strides = array<i32>} : memref<108x256xf32, #tpu.memory_space<vmem>>, vector<4x256xf32>,
    %c0_32 = arith.constant 0 : index
    %c101 = arith.constant 101 : index
    %26 = vector.load %arg6[%c0_32, %c101] : memref<4x768xf32, #tpu.memory_space<vmem>>, vector<4x256xf32>
    %c40 = arith.constant 40 : index
    %c0_33 = arith.constant 0 : index
    %27 = vector.load %arg7[%c40, %c0_33] : memref<108x256xf32, #tpu.memory_space<vmem>>, vector<4x256xf32>
    tpu.vector_store %arg7[%c40, %c0_33], %26 {strides = array<i32>} : memref<108x256xf32, #tpu.memory_space<vmem>>, vector<4x256xf32>,
    %c0_34 = arith.constant 0 : index
    %c102 = arith.constant 102 : index
    %28 = vector.load %arg6[%c0_34, %c102] : memref<4x768xf32, #tpu.memory_space<vmem>>, vector<4x256xf32>
    %c44 = arith.constant 44 : index
    %c0_35 = arith.constant 0 : index
    %29 = vector.load %arg7[%c44, %c0_35] : memref<108x256xf32, #tpu.memory_space<vmem>>, vector<4x256xf32>
    tpu.vector_store %arg7[%c44, %c0_35], %28 {strides = array<i32>} : memref<108x256xf32, #tpu.memory_space<vmem>>, vector<4x256xf32>,
    %c0_36 = arith.constant 0 : index
    %c110 = arith.constant 110 : index
    %30 = vector.load %arg6[%c0_36, %c110] : memref<4x768xf32, #tpu.memory_space<vmem>>, vector<4x256xf32>
    %c48 = arith.constant 48 : index
    %c0_37 = arith.constant 0 : index
    %31 = vector.load %arg7[%c48, %c0_37] : memref<108x256xf32, #tpu.memory_space<vmem>>, vector<4x256xf32>
    tpu.vector_store %arg7[%c48, %c0_37], %30 {strides = array<i32>} : memref<108x256xf32, #tpu.memory_space<vmem>>, vector<4x256xf32>,
    %c0_38 = arith.constant 0 : index
    %c111 = arith.constant 111 : index
    %32 = vector.load %arg6[%c0_38, %c111] : memref<4x768xf32, #tpu.memory_space<vmem>>, vector<4x256xf32>
    %c52 = arith.constant 52 : index
    %c0_39 = arith.constant 0 : index
    %33 = vector.load %arg7[%c52, %c0_39] : memref<108x256xf32, #tpu.memory_space<vmem>>, vector<4x256xf32>
    tpu.vector_store %arg7[%c52, %c0_39], %32 {strides = array<i32>} : memref<108x256xf32, #tpu.memory_space<vmem>>, vector<4x256xf32>,
    %c0_40 = arith.constant 0 : index
    %c112 = arith.constant 112 : index
    %34 = vector.load %arg6[%c0_40, %c112] : memref<4x768xf32, #tpu.memory_space<vmem>>, vector<4x256xf32>
    %c56 = arith.constant 56 : index
    %c0_41 = arith.constant 0 : index
    %35 = vector.load %arg7[%c56, %c0_41] : memref<108x256xf32, #tpu.memory_space<vmem>>, vector<4x256xf32>
    tpu.vector_store %arg7[%c56, %c0_41], %34 {strides = array<i32>} : memref<108x256xf32, #tpu.memory_space<vmem>>, vector<4x256xf32>,
    %c0_42 = arith.constant 0 : index
    %c120 = arith.constant 120 : index
    %36 = vector.load %arg6[%c0_42, %c120] : memref<4x768xf32, #tpu.memory_space<vmem>>, vector<4x256xf32>
    %c60 = arith.constant 60 : index
    %c0_43 = arith.constant 0 : index
    %37 = vector.load %arg7[%c60, %c0_43] : memref<108x256xf32, #tpu.memory_space<vmem>>, vector<4x256xf32>
    tpu.vector_store %arg7[%c60, %c0_43], %36 {strides = array<i32>} : memref<108x256xf32, #tpu.memory_space<vmem>>, vector<4x256xf32>,
    %c0_44 = arith.constant 0 : index
    %c121 = arith.constant 121 : index
    %38 = vector.load %arg6[%c0_44, %c121] : memref<4x768xf32, #tpu.memory_space<vmem>>, vector<4x256xf32>
    %c64 = arith.constant 64 : index
    %c0_45 = arith.constant 0 : index
    %39 = vector.load %arg7[%c64, %c0_45] : memref<108x256xf32, #tpu.memory_space<vmem>>, vector<4x256xf32>
    tpu.vector_store %arg7[%c64, %c0_45], %38 {strides = array<i32>} : memref<108x256xf32, #tpu.memory_space<vmem>>, vector<4x256xf32>,
    %c0_46 = arith.constant 0 : index
    %c122 = arith.constant 122 : index
    %40 = vector.load %arg6[%c0_46, %c122] : memref<4x768xf32, #tpu.memory_space<vmem>>, vector<4x256xf32>
    %c68 = arith.constant 68 : index
    %c0_47 = arith.constant 0 : index
    %41 = vector.load %arg7[%c68, %c0_47] : memref<108x256xf32, #tpu.memory_space<vmem>>, vector<4x256xf32>
    tpu.vector_store %arg7[%c68, %c0_47], %40 {strides = array<i32>} : memref<108x256xf32, #tpu.memory_space<vmem>>, vector<4x256xf32>,
    %c0_48 = arith.constant 0 : index
    %c200 = arith.constant 200 : index
    %42 = vector.load %arg6[%c0_48, %c200] : memref<4x768xf32, #tpu.memory_space<vmem>>, vector<4x256xf32>
    %c72 = arith.constant 72 : index
    %c0_49 = arith.constant 0 : index
    %43 = vector.load %arg7[%c72, %c0_49] : memref<108x256xf32, #tpu.memory_space<vmem>>, vector<4x256xf32>
    tpu.vector_store %arg7[%c72, %c0_49], %42 {strides = array<i32>} : memref<108x256xf32, #tpu.memory_space<vmem>>, vector<4x256xf32>,
    %c0_50 = arith.constant 0 : index
    %c201 = arith.constant 201 : index
    %44 = vector.load %arg6[%c0_50, %c201] : memref<4x768xf32, #tpu.memory_space<vmem>>, vector<4x256xf32>
    %c76 = arith.constant 76 : index
    %c0_51 = arith.constant 0 : index
    %45 = vector.load %arg7[%c76, %c0_51] : memref<108x256xf32, #tpu.memory_space<vmem>>, vector<4x256xf32>
    tpu.vector_store %arg7[%c76, %c0_51], %44 {strides = array<i32>} : memref<108x256xf32, #tpu.memory_space<vmem>>, vector<4x256xf32>,
    %c0_52 = arith.constant 0 : index
    %c202 = arith.constant 202 : index
    %46 = vector.load %arg6[%c0_52, %c202] : memref<4x768xf32, #tpu.memory_space<vmem>>, vector<4x256xf32>
    %c80 = arith.constant 80 : index
    %c0_53 = arith.constant 0 : index
    %47 = vector.load %arg7[%c80, %c0_53] : memref<108x256xf32, #tpu.memory_space<vmem>>, vector<4x256xf32>
    tpu.vector_store %arg7[%c80, %c0_53], %46 {strides = array<i32>} : memref<108x256xf32, #tpu.memory_space<vmem>>, vector<4x256xf32>,
    %c0_54 = arith.constant 0 : index
    %c210 = arith.constant 210 : index
    %48 = vector.load %arg6[%c0_54, %c210] : memref<4x768xf32, #tpu.memory_space<vmem>>, vector<4x256xf32>
    %c84 = arith.constant 84 : index
    %c0_55 = arith.constant 0 : index
    %49 = vector.load %arg7[%c84, %c0_55] : memref<108x256xf32, #tpu.memory_space<vmem>>, vector<4x256xf32>
    tpu.vector_store %arg7[%c84, %c0_55], %48 {strides = array<i32>} : memref<108x256xf32, #tpu.memory_space<vmem>>, vector<4x256xf32>,
    %c0_56 = arith.constant 0 : index
    %c211 = arith.constant 211 : index
    %50 = vector.load %arg6[%c0_56, %c211] : memref<4x768xf32, #tpu.memory_space<vmem>>, vector<4x256xf32>
    %c88 = arith.constant 88 : index
    %c0_57 = arith.constant 0 : index
    %51 = vector.load %arg7[%c88, %c0_57] : memref<108x256xf32, #tpu.memory_space<vmem>>, vector<4x256xf32>
    tpu.vector_store %arg7[%c88, %c0_57], %50 {strides = array<i32>} : memref<108x256xf32, #tpu.memory_space<vmem>>, vector<4x256xf32>,
    %c0_58 = arith.constant 0 : index
    %c212 = arith.constant 212 : index
    %52 = vector.load %arg6[%c0_58, %c212] : memref<4x768xf32, #tpu.memory_space<vmem>>, vector<4x256xf32>
    %c92 = arith.constant 92 : index
    %c0_59 = arith.constant 0 : index
    %53 = vector.load %arg7[%c92, %c0_59] : memref<108x256xf32, #tpu.memory_space<vmem>>, vector<4x256xf32>
    tpu.vector_store %arg7[%c92, %c0_59], %52 {strides = array<i32>} : memref<108x256xf32, #tpu.memory_space<vmem>>, vector<4x256xf32>,
    %c0_60 = arith.constant 0 : index
    %c220 = arith.constant 220 : index
    %54 = vector.load %arg6[%c0_60, %c220] : memref<4x768xf32, #tpu.memory_space<vmem>>, vector<4x256xf32>
    %c96 = arith.constant 96 : index
    %c0_61 = arith.constant 0 : index
    %55 = vector.load %arg7[%c96, %c0_61] : memref<108x256xf32, #tpu.memory_space<vmem>>, vector<4x256xf32>
    tpu.vector_store %arg7[%c96, %c0_61], %54 {strides = array<i32>} : memref<108x256xf32, #tpu.memory_space<vmem>>, vector<4x256xf32>,
    %c0_62 = arith.constant 0 : index
    %c221 = arith.constant 221 : index
    %56 = vector.load %arg6[%c0_62, %c221] : memref<4x768xf32, #tpu.memory_space<vmem>>, vector<4x256xf32>
    %c100_63 = arith.constant 100 : index
    %c0_64 = arith.constant 0 : index
    %57 = vector.load %arg7[%c100_63, %c0_64] : memref<108x256xf32, #tpu.memory_space<vmem>>, vector<4x256xf32>
    tpu.vector_store %arg7[%c100_63, %c0_64], %56 {strides = array<i32>} : memref<108x256xf32, #tpu.memory_space<vmem>>, vector<4x256xf32>,
    %c0_65 = arith.constant 0 : index
    %c222 = arith.constant 222 : index
    %58 = vector.load %arg6[%c0_65, %c222] : memref<4x768xf32, #tpu.memory_space<vmem>>, vector<4x256xf32>
    %c104 = arith.constant 104 : index
    %c0_66 = arith.constant 0 : index
    %59 = vector.load %arg7[%c104, %c0_66] : memref<108x256xf32, #tpu.memory_space<vmem>>, vector<4x256xf32>
    tpu.vector_store %arg7[%c104, %c0_66], %58 {strides = array<i32>} : memref<108x256xf32, #tpu.memory_space<vmem>>, vector<4x256xf32>,
    %c0_67 = arith.constant 0 : index
    %c0_68 = arith.constant 0 : index
    %c0_69 = arith.constant 0 : index
    %60 = vector.load %arg4[%c0_67, %c0_68, %c0_69] : memref<1x8x108xf32, #tpu.memory_space<vmem>>, vector<1x8x108xf32>
    %61 = vector.shape_cast %60 : vector<1x8x108xf32> to vector<8x108xf32>
    %c0_70 = arith.constant 0 : index
    %c0_71 = arith.constant 0 : index
    %62 = vector.load %arg7[%c0_70, %c0_71] : memref<108x256xf32, #tpu.memory_space<vmem>>, vector<108x256xf32>
    %cst = arith.constant dense<0.000000e+00> : vector<8x256xf32>
    %63 = tpu.matmul %61, %62, %cst {dimension_numbers = #tpu.dot_dimension_numbers<[1], [0], [0], [1], [0, 0, 1, 1], [], []>} : vector<8x108xf32>, vector<108x256xf32>, vector<8x256xf32> -> vector<8x256xf32>
    %c0_72 = arith.constant 0 : index
    %c0_73 = arith.constant 0 : index
    %c0_74 = arith.constant 0 : index
    %64 = vector.load %arg5[%c0_72, %c0_73, %c0_74] : memref<1x8x512xf32, #tpu.memory_space<vmem>>, vector<1x8x256xf32>
    %65 = vector.shape_cast %64 : vector<1x8x256xf32> to vector<8x256xf32>
    %66 = vector.shape_cast %63 : vector<8x256xf32> to vector<1x8x256xf32>
    tpu.vector_store %arg5[%c0_72, %c0_73, %c0_74], %66 {strides = array<i32>} : memref<1x8x512xf32, #tpu.memory_space<vmem>>, vector<1x8x256xf32>,
    %c0_75 = arith.constant 0 : index
    %c256 = arith.constant 256 : index
    %67 = vector.load %arg6[%c0_75, %c256] : memref<4x768xf32, #tpu.memory_space<vmem>>, vector<4x256xf32>
    %c0_76 = arith.constant 0 : index
    %c0_77 = arith.constant 0 : index
    %68 = vector.load %arg7[%c0_76, %c0_77] : memref<108x256xf32, #tpu.memory_space<vmem>>, vector<4x256xf32>
    tpu.vector_store %arg7[%c0_76, %c0_77], %67 {strides = array<i32>} : memref<108x256xf32, #tpu.memory_space<vmem>>, vector<4x256xf32>,
    %c0_78 = arith.constant 0 : index
    %c257 = arith.constant 257 : index
    %69 = vector.load %arg6[%c0_78, %c257] : memref<4x768xf32, #tpu.memory_space<vmem>>, vector<4x256xf32>
    %c4_79 = arith.constant 4 : index
    %c0_80 = arith.constant 0 : index
    %70 = vector.load %arg7[%c4_79, %c0_80] : memref<108x256xf32, #tpu.memory_space<vmem>>, vector<4x256xf32>
    tpu.vector_store %arg7[%c4_79, %c0_80], %69 {strides = array<i32>} : memref<108x256xf32, #tpu.memory_space<vmem>>, vector<4x256xf32>,
    %c0_81 = arith.constant 0 : index
    %c258 = arith.constant 258 : index
    %71 = vector.load %arg6[%c0_81, %c258] : memref<4x768xf32, #tpu.memory_space<vmem>>, vector<4x256xf32>
    %c8_82 = arith.constant 8 : index
    %c0_83 = arith.constant 0 : index
    %72 = vector.load %arg7[%c8_82, %c0_83] : memref<108x256xf32, #tpu.memory_space<vmem>>, vector<4x256xf32>
    tpu.vector_store %arg7[%c8_82, %c0_83], %71 {strides = array<i32>} : memref<108x256xf32, #tpu.memory_space<vmem>>, vector<4x256xf32>,
    %c0_84 = arith.constant 0 : index
    %c266 = arith.constant 266 : index
    %73 = vector.load %arg6[%c0_84, %c266] : memref<4x768xf32, #tpu.memory_space<vmem>>, vector<4x256xf32>
    %c12_85 = arith.constant 12 : index
    %c0_86 = arith.constant 0 : index
    %74 = vector.load %arg7[%c12_85, %c0_86] : memref<108x256xf32, #tpu.memory_space<vmem>>, vector<4x256xf32>
    tpu.vector_store %arg7[%c12_85, %c0_86], %73 {strides = array<i32>} : memref<108x256xf32, #tpu.memory_space<vmem>>, vector<4x256xf32>,
    %c0_87 = arith.constant 0 : index
    %c267 = arith.constant 267 : index
    %75 = vector.load %arg6[%c0_87, %c267] : memref<4x768xf32, #tpu.memory_space<vmem>>, vector<4x256xf32>
    %c16_88 = arith.constant 16 : index
    %c0_89 = arith.constant 0 : index
    %76 = vector.load %arg7[%c16_88, %c0_89] : memref<108x256xf32, #tpu.memory_space<vmem>>, vector<4x256xf32>
    tpu.vector_store %arg7[%c16_88, %c0_89], %75 {strides = array<i32>} : memref<108x256xf32, #tpu.memory_space<vmem>>, vector<4x256xf32>,
    %c0_90 = arith.constant 0 : index
    %c268 = arith.constant 268 : index
    %77 = vector.load %arg6[%c0_90, %c268] : memref<4x768xf32, #tpu.memory_space<vmem>>, vector<4x256xf32>
    %c20_91 = arith.constant 20 : index
    %c0_92 = arith.constant 0 : index
    %78 = vector.load %arg7[%c20_91, %c0_92] : memref<108x256xf32, #tpu.memory_space<vmem>>, vector<4x256xf32>
    tpu.vector_store %arg7[%c20_91, %c0_92], %77 {strides = array<i32>} : memref<108x256xf32, #tpu.memory_space<vmem>>, vector<4x256xf32>,
    %c0_93 = arith.constant 0 : index
    %c276 = arith.constant 276 : index
    %79 = vector.load %arg6[%c0_93, %c276] : memref<4x768xf32, #tpu.memory_space<vmem>>, vector<4x256xf32>
    %c24_94 = arith.constant 24 : index
    %c0_95 = arith.constant 0 : index
    %80 = vector.load %arg7[%c24_94, %c0_95] : memref<108x256xf32, #tpu.memory_space<vmem>>, vector<4x256xf32>
    tpu.vector_store %arg7[%c24_94, %c0_95], %79 {strides = array<i32>} : memref<108x256xf32, #tpu.memory_space<vmem>>, vector<4x256xf32>,
    %c0_96 = arith.constant 0 : index
    %c277 = arith.constant 277 : index
    %81 = vector.load %arg6[%c0_96, %c277] : memref<4x768xf32, #tpu.memory_space<vmem>>, vector<4x256xf32>
    %c28_97 = arith.constant 28 : index
    %c0_98 = arith.constant 0 : index
    %82 = vector.load %arg7[%c28_97, %c0_98] : memref<108x256xf32, #tpu.memory_space<vmem>>, vector<4x256xf32>
    tpu.vector_store %arg7[%c28_97, %c0_98], %81 {strides = array<i32>} : memref<108x256xf32, #tpu.memory_space<vmem>>, vector<4x256xf32>,
    %c0_99 = arith.constant 0 : index
    %c278 = arith.constant 278 : index
    %83 = vector.load %arg6[%c0_99, %c278] : memref<4x768xf32, #tpu.memory_space<vmem>>, vector<4x256xf32>
    %c32_100 = arith.constant 32 : index
    %c0_101 = arith.constant 0 : index
    %84 = vector.load %arg7[%c32_100, %c0_101] : memref<108x256xf32, #tpu.memory_space<vmem>>, vector<4x256xf32>
    tpu.vector_store %arg7[%c32_100, %c0_101], %83 {strides = array<i32>} : memref<108x256xf32, #tpu.memory_space<vmem>>, vector<4x256xf32>,
    %c0_102 = arith.constant 0 : index
    %c356 = arith.constant 356 : index
    %85 = vector.load %arg6[%c0_102, %c356] : memref<4x768xf32, #tpu.memory_space<vmem>>, vector<4x256xf32>
    %c36_103 = arith.constant 36 : index
    %c0_104 = arith.constant 0 : index
    %86 = vector.load %arg7[%c36_103, %c0_104] : memref<108x256xf32, #tpu.memory_space<vmem>>, vector<4x256xf32>
    tpu.vector_store %arg7[%c36_103, %c0_104], %85 {strides = array<i32>} : memref<108x256xf32, #tpu.memory_space<vmem>>, vector<4x256xf32>,
    %c0_105 = arith.constant 0 : index
    %c357 = arith.constant 357 : index
    %87 = vector.load %arg6[%c0_105, %c357] : memref<4x768xf32, #tpu.memory_space<vmem>>, vector<4x256xf32>
    %c40_106 = arith.constant 40 : index
    %c0_107 = arith.constant 0 : index
    %88 = vector.load %arg7[%c40_106, %c0_107] : memref<108x256xf32, #tpu.memory_space<vmem>>, vector<4x256xf32>
    tpu.vector_store %arg7[%c40_106, %c0_107], %87 {strides = array<i32>} : memref<108x256xf32, #tpu.memory_space<vmem>>, vector<4x256xf32>,
    %c0_108 = arith.constant 0 : index
    %c358 = arith.constant 358 : index
    %89 = vector.load %arg6[%c0_108, %c358] : memref<4x768xf32, #tpu.memory_space<vmem>>, vector<4x256xf32>
    %c44_109 = arith.constant 44 : index
    %c0_110 = arith.constant 0 : index
    %90 = vector.load %arg7[%c44_109, %c0_110] : memref<108x256xf32, #tpu.memory_space<vmem>>, vector<4x256xf32>
    tpu.vector_store %arg7[%c44_109, %c0_110], %89 {strides = array<i32>} : memref<108x256xf32, #tpu.memory_space<vmem>>, vector<4x256xf32>,
    %c0_111 = arith.constant 0 : index
    %c366 = arith.constant 366 : index
    %91 = vector.load %arg6[%c0_111, %c366] : memref<4x768xf32, #tpu.memory_space<vmem>>, vector<4x256xf32>
    %c48_112 = arith.constant 48 : index
    %c0_113 = arith.constant 0 : index
    %92 = vector.load %arg7[%c48_112, %c0_113] : memref<108x256xf32, #tpu.memory_space<vmem>>, vector<4x256xf32>
    tpu.vector_store %arg7[%c48_112, %c0_113], %91 {strides = array<i32>} : memref<108x256xf32, #tpu.memory_space<vmem>>, vector<4x256xf32>,
    %c0_114 = arith.constant 0 : index
    %c367 = arith.constant 367 : index
    %93 = vector.load %arg6[%c0_114, %c367] : memref<4x768xf32, #tpu.memory_space<vmem>>, vector<4x256xf32>
    %c52_115 = arith.constant 52 : index
    %c0_116 = arith.constant 0 : index
    %94 = vector.load %arg7[%c52_115, %c0_116] : memref<108x256xf32, #tpu.memory_space<vmem>>, vector<4x256xf32>
    tpu.vector_store %arg7[%c52_115, %c0_116], %93 {strides = array<i32>} : memref<108x256xf32, #tpu.memory_space<vmem>>, vector<4x256xf32>,
    %c0_117 = arith.constant 0 : index
    %c368 = arith.constant 368 : index
    %95 = vector.load %arg6[%c0_117, %c368] : memref<4x768xf32, #tpu.memory_space<vmem>>, vector<4x256xf32>
    %c56_118 = arith.constant 56 : index
    %c0_119 = arith.constant 0 : index
    %96 = vector.load %arg7[%c56_118, %c0_119] : memref<108x256xf32, #tpu.memory_space<vmem>>, vector<4x256xf32>
    tpu.vector_store %arg7[%c56_118, %c0_119], %95 {strides = array<i32>} : memref<108x256xf32, #tpu.memory_space<vmem>>, vector<4x256xf32>,
    %c0_120 = arith.constant 0 : index
    %c376 = arith.constant 376 : index
    %97 = vector.load %arg6[%c0_120, %c376] : memref<4x768xf32, #tpu.memory_space<vmem>>, vector<4x256xf32>
    %c60_121 = arith.constant 60 : index
    %c0_122 = arith.constant 0 : index
    %98 = vector.load %arg7[%c60_121, %c0_122] : memref<108x256xf32, #tpu.memory_space<vmem>>, vector<4x256xf32>
    tpu.vector_store %arg7[%c60_121, %c0_122], %97 {strides = array<i32>} : memref<108x256xf32, #tpu.memory_space<vmem>>, vector<4x256xf32>,
    %c0_123 = arith.constant 0 : index
    %c377 = arith.constant 377 : index
    %99 = vector.load %arg6[%c0_123, %c377] : memref<4x768xf32, #tpu.memory_space<vmem>>, vector<4x256xf32>
    %c64_124 = arith.constant 64 : index
    %c0_125 = arith.constant 0 : index
    %100 = vector.load %arg7[%c64_124, %c0_125] : memref<108x256xf32, #tpu.memory_space<vmem>>, vector<4x256xf32>
    tpu.vector_store %arg7[%c64_124, %c0_125], %99 {strides = array<i32>} : memref<108x256xf32, #tpu.memory_space<vmem>>, vector<4x256xf32>,
    %c0_126 = arith.constant 0 : index
    %c378 = arith.constant 378 : index
    %101 = vector.load %arg6[%c0_126, %c378] : memref<4x768xf32, #tpu.memory_space<vmem>>, vector<4x256xf32>
    %c68_127 = arith.constant 68 : index
    %c0_128 = arith.constant 0 : index
    %102 = vector.load %arg7[%c68_127, %c0_128] : memref<108x256xf32, #tpu.memory_space<vmem>>, vector<4x256xf32>
    tpu.vector_store %arg7[%c68_127, %c0_128], %101 {strides = array<i32>} : memref<108x256xf32, #tpu.memory_space<vmem>>, vector<4x256xf32>,
    %c0_129 = arith.constant 0 : index
    %c456 = arith.constant 456 : index
    %103 = vector.load %arg6[%c0_129, %c456] : memref<4x768xf32, #tpu.memory_space<vmem>>, vector<4x256xf32>
    %c72_130 = arith.constant 72 : index
    %c0_131 = arith.constant 0 : index
    %104 = vector.load %arg7[%c72_130, %c0_131] : memref<108x256xf32, #tpu.memory_space<vmem>>, vector<4x256xf32>
    tpu.vector_store %arg7[%c72_130, %c0_131], %103 {strides = array<i32>} : memref<108x256xf32, #tpu.memory_space<vmem>>, vector<4x256xf32>,
    %c0_132 = arith.constant 0 : index
    %c457 = arith.constant 457 : index
    %105 = vector.load %arg6[%c0_132, %c457] : memref<4x768xf32, #tpu.memory_space<vmem>>, vector<4x256xf32>
    %c76_133 = arith.constant 76 : index
    %c0_134 = arith.constant 0 : index
    %106 = vector.load %arg7[%c76_133, %c0_134] : memref<108x256xf32, #tpu.memory_space<vmem>>, vector<4x256xf32>
    tpu.vector_store %arg7[%c76_133, %c0_134], %105 {strides = array<i32>} : memref<108x256xf32, #tpu.memory_space<vmem>>, vector<4x256xf32>,
    %c0_135 = arith.constant 0 : index
    %c458 = arith.constant 458 : index
    %107 = vector.load %arg6[%c0_135, %c458] : memref<4x768xf32, #tpu.memory_space<vmem>>, vector<4x256xf32>
    %c80_136 = arith.constant 80 : index
    %c0_137 = arith.constant 0 : index
    %108 = vector.load %arg7[%c80_136, %c0_137] : memref<108x256xf32, #tpu.memory_space<vmem>>, vector<4x256xf32>
    tpu.vector_store %arg7[%c80_136, %c0_137], %107 {strides = array<i32>} : memref<108x256xf32, #tpu.memory_space<vmem>>, vector<4x256xf32>,
    %c0_138 = arith.constant 0 : index
    %c466 = arith.constant 466 : index
    %109 = vector.load %arg6[%c0_138, %c466] : memref<4x768xf32, #tpu.memory_space<vmem>>, vector<4x256xf32>
    %c84_139 = arith.constant 84 : index
    %c0_140 = arith.constant 0 : index
    %110 = vector.load %arg7[%c84_139, %c0_140] : memref<108x256xf32, #tpu.memory_space<vmem>>, vector<4x256xf32>
    tpu.vector_store %arg7[%c84_139, %c0_140], %109 {strides = array<i32>} : memref<108x256xf32, #tpu.memory_space<vmem>>, vector<4x256xf32>,
    %c0_141 = arith.constant 0 : index
    %c467 = arith.constant 467 : index
    %111 = vector.load %arg6[%c0_141, %c467] : memref<4x768xf32, #tpu.memory_space<vmem>>, vector<4x256xf32>
    %c88_142 = arith.constant 88 : index
    %c0_143 = arith.constant 0 : index
    %112 = vector.load %arg7[%c88_142, %c0_143] : memref<108x256xf32, #tpu.memory_space<vmem>>, vector<4x256xf32>
    tpu.vector_store %arg7[%c88_142, %c0_143], %111 {strides = array<i32>} : memref<108x256xf32, #tpu.memory_space<vmem>>, vector<4x256xf32>,
    %c0_144 = arith.constant 0 : index
    %c468 = arith.constant 468 : index
    %113 = vector.load %arg6[%c0_144, %c468] : memref<4x768xf32, #tpu.memory_space<vmem>>, vector<4x256xf32>
    %c92_145 = arith.constant 92 : index
    %c0_146 = arith.constant 0 : index
    %114 = vector.load %arg7[%c92_145, %c0_146] : memref<108x256xf32, #tpu.memory_space<vmem>>, vector<4x256xf32>
    tpu.vector_store %arg7[%c92_145, %c0_146], %113 {strides = array<i32>} : memref<108x256xf32, #tpu.memory_space<vmem>>, vector<4x256xf32>,
    %c0_147 = arith.constant 0 : index
    %c476 = arith.constant 476 : index
    %115 = vector.load %arg6[%c0_147, %c476] : memref<4x768xf32, #tpu.memory_space<vmem>>, vector<4x256xf32>
    %c96_148 = arith.constant 96 : index
    %c0_149 = arith.constant 0 : index
    %116 = vector.load %arg7[%c96_148, %c0_149] : memref<108x256xf32, #tpu.memory_space<vmem>>, vector<4x256xf32>
    tpu.vector_store %arg7[%c96_148, %c0_149], %115 {strides = array<i32>} : memref<108x256xf32, #tpu.memory_space<vmem>>, vector<4x256xf32>,
    %c0_150 = arith.constant 0 : index
    %c477 = arith.constant 477 : index
    %117 = vector.load %arg6[%c0_150, %c477] : memref<4x768xf32, #tpu.memory_space<vmem>>, vector<4x256xf32>
    %c100_151 = arith.constant 100 : index
    %c0_152 = arith.constant 0 : index
    %118 = vector.load %arg7[%c100_151, %c0_152] : memref<108x256xf32, #tpu.memory_space<vmem>>, vector<4x256xf32>
    tpu.vector_store %arg7[%c100_151, %c0_152], %117 {strides = array<i32>} : memref<108x256xf32, #tpu.memory_space<vmem>>, vector<4x256xf32>,
    %c0_153 = arith.constant 0 : index
    %c478 = arith.constant 478 : index
    %119 = vector.load %arg6[%c0_153, %c478] : memref<4x768xf32, #tpu.memory_space<vmem>>, vector<4x256xf32>
    %c104_154 = arith.constant 104 : index
    %c0_155 = arith.constant 0 : index
    %120 = vector.load %arg7[%c104_154, %c0_155] : memref<108x256xf32, #tpu.memory_space<vmem>>, vector<4x256xf32>
    tpu.vector_store %arg7[%c104_154, %c0_155], %119 {strides = array<i32>} : memref<108x256xf32, #tpu.memory_space<vmem>>, vector<4x256xf32>,
    %c0_156 = arith.constant 0 : index
    %c0_157 = arith.constant 0 : index
    %c0_158 = arith.constant 0 : index
    %121 = vector.load %arg4[%c0_156, %c0_157, %c0_158] : memref<1x8x108xf32, #tpu.memory_space<vmem>>, vector<1x8x108xf32>
    %122 = vector.shape_cast %121 : vector<1x8x108xf32> to vector<8x108xf32>
    %c0_159 = arith.constant 0 : index
    %c0_160 = arith.constant 0 : index
    %123 = vector.load %arg7[%c0_159, %c0_160] : memref<108x256xf32, #tpu.memory_space<vmem>>, vector<108x256xf32>
    %cst_161 = arith.constant dense<0.000000e+00> : vector<8x256xf32>
    %124 = tpu.matmul %122, %123, %cst_161 {dimension_numbers = #tpu.dot_dimension_numbers<[1], [0], [0], [1], [0, 0, 1, 1], [], []>} : vector<8x108xf32>, vector<108x256xf32>, vector<8x256xf32> -> vector<8x256xf32>
    %c0_162 = arith.constant 0 : index
    %c0_163 = arith.constant 0 : index
    %c256_164 = arith.constant 256 : index
    %125 = vector.load %arg5[%c0_162, %c0_163, %c256_164] : memref<1x8x512xf32, #tpu.memory_space<vmem>>, vector<1x8x256xf32>
    %126 = vector.shape_cast %125 : vector<1x8x256xf32> to vector<8x256xf32>
    %127 = vector.shape_cast %124 : vector<8x256xf32> to vector<1x8x256xf32>
    tpu.vector_store %arg5[%c0_162, %c0_163, %c256_164], %127 {strides = array<i32>} : memref<1x8x512xf32, #tpu.memory_space<vmem>>, vector<1x8x256xf32>,
    return
  }
  func.func @transform_0(%arg0: i32, %arg1: i32) -> (i32, i32, i32) {
    %c0_i32 = arith.constant 0 : i32
    %c0_i32_0 = arith.constant 0 : i32
    return %arg0, %c0_i32, %arg1 : i32, i32, i32
  }
  func.func @transform_1(%arg0: i32, %arg1: i32) -> (i32, i32, i32) {
    %c1_i32 = arith.constant 1 : i32
    %0 = arith.addi %arg1, %c1_i32 : i32
    %c2_i32 = arith.constant 2 : i32
    %1 = arith.muli %0, %c2_i32 : i32
    %c0_i32 = arith.constant 0 : i32
    %c0_i32_0 = arith.constant 0 : i32
    return %arg0, %c0_i32, %1 : i32, i32, i32
  }
  func.func @transform_2(%arg0: i32, %arg1: i32) -> (i32, i32, i32) {
    %c0_i32 = arith.constant 0 : i32
    %c0_i32_0 = arith.constant 0 : i32
    %c0_i32_1 = arith.constant 0 : i32
    %c0_i32_2 = arith.constant 0 : i32
    return %c0_i32, %c0_i32_0, %c0_i32_1 : i32, i32, i32
  }
  func.func @transform_3(%arg0: i32, %arg1: i32) -> (i32, i32, i32) {
    %c0_i32 = arith.constant 0 : i32
    %c0_i32_0 = arith.constant 0 : i32
    return %arg0, %c0_i32, %arg1 : i32, i32, i32
  }
}

</mosaic_0001>

<bundles_post_ra>
// kernel: tpu_custom_call.1
= control target key start
LH: loop header
LB: loop body
LE: loop exit
PB: predicated region body
PF: predicated region fallthrough
CT: control target
= control target key end

     0   :  { %s2889_s0 = inlined_call_operand.hbm [shape: f32[2,4,1280], index: 0, kind: input, shape index: {}]   ;;  %s2890_s1 = inlined_call_operand.hbm [shape: f32[2,4,1280], index: 1, kind: input, shape index: {}]   ;;  %s2891_s2 = inlined_call_operand.hbm [shape: f32[1,8,108], index: 2, kind: input, shape index: {}]   ;;  %s2892_s3 = inlined_call_operand.hbm [shape: f32[2,8,1024], index: 3, kind: output, shape index: {}]  }
   0x1   :  { %2928 = sst [smem:[#allocation24_spill]] %s2891_s2 }
   0x2   :  { %2929 = sst [smem:[#allocation25_spill]] %s2892_s3 }
   0x3   :  { %8 = vsyncpa [#allocation5], 0 }
   0x4   :  { %10 = vsyncpa [#allocation5 + $0x1], 0 }
   0x5   :  { %11 = vsyncpa [#allocation8], 0 }
   0x6   :  { %13 = vsyncpa [#allocation8 + $0x1], 0 }
   0x7   :  { %14 = vsyncpa [#allocation6], 0 }
   0x8   :  { %16 = vsyncpa [#allocation6 + $0x1], 0  ;;  %s2265_s12 = smov 0   ;;  %s2267_s13 = smov 0  }
   0x9   :  { %s2269_s14 = smov 0   ;;  %s2271_s15 = smov 0  }
   0xa   :  { %s2273_s16 = smov 0   ;;  %s2275_s17 = smov 0  }
   0xb   :  { %s2277_s18 = smov 0   ;;  %s2279_s19 = smov 0  }
   0xc   :  { %s2281_s20 = smov 0   ;;  %s2283_s21 = smov 0  }
   0xd   :  { %s2285_s22 = smov 0  }
   0xe LB: > { %2930 = sst [smem:[#allocation15_spill]] %s2187_s15  ;;  %s2321_s23 = sadd.s32 4294967295, %s2215_s22   ;;  %s2215_s22 = sphi %s2285_s22, %s22_s22   ;;  %s2211_s21 = sphi %s2283_s21, %s2999_s21   ;;  %s2207_s20 = sphi %s2281_s20, %s2998_s20   ;;  %s2203_s19 = sphi %s2279_s19, %s2997_s19   ;;  %s2199_s18 = sphi %s2277_s18, %s2996_s18   ;;  %s2195_s17 = sphi %s2275_s17, %s2988_s17   ;;  %s2191_s16 = sphi %s2273_s16, %s2995_s16   ;;  %s2187_s15 = sphi %s2271_s15, %s2994_s15   ;;  %s2183_s14 = sphi %s2269_s14, %s2993_s14   ;;  %s2179_s13 = sphi %s2267_s13, %s2992_s13   ;;  %s2175_s12 = sphi %s2265_s12, %s2991_s12  }
   0xf   : > { %2931 = sst [smem:[#allocation16_spill]] %s2195_s17  ;;  %s31_s25 = sadd.s32 1, %s2207_s20 }
  0x10   : > { %2932 = sst [smem:[#allocation17_spill]] %s2203_s19  ;;  %s34_s26 = sadd.s32 1, %s2211_s21 }
  0x11   : > { %p32_p0 = scmp.ge.s32.totalorder %s31_s25, 2  ;;  %s43_s27 = sadd.s32 1, %s2195_s17 }
  0x12   : > { %p50_p1 = scmp.ne.s32.totalorder %s2195_s17, %s2191_s16  ;;  %p51_p2 = scmp.eq.s32.totalorder %s2215_s22, 0 }
  0x13   : > { %s3001_s25 = smov (%p32_p0, %s31_s25), 0  ;;  %s3003_s26 = smov (!%p32_p0, %s34_s26), %s2211_s21 }
  0x14   : > { %2933 = sst [smem:[#allocation18_spill]] %s3001_s25  ;;  %s39_s28 = ssub.s32 %s2207_s20, %s3001_s25 }
  0x15   : > { %p2340_p3 = por %p51_p2, %p50_p1  ;;  %p36_p4 = scmp.ge.s32.totalorder %s3003_s26, 2 }
  0x16   : > { %p2894_p5 = scmp.ne.s32.totalorder %s2191_s16, %s2187_s15  ;;  %p57_p6 = scmp.eq.s32.totalorder %s2321_s23, 0 }
  0x17   : > { %s2934_s29 = scalar_select %p2340_p3, 1, 0 }
  0x18   : > { %s1846_s30 = sshll.u32 %s2207_s20, 1  ;;  %s3005_s26 = smov (%p36_p4, %s3003_s26), 0 }
  0x19   : > { %2935 = sst [smem:[#allocation19_spill]] %s3005_s26  ;;  %p2355_p7 = por %p57_p6, %p2894_p5 }
  0x1a   : > { %s1847_s5 = sadd.s32 2, %s1846_s30  ;;  %s38_s6 = ssub.s32 %s2211_s21, %s3005_s26 }
  0x1b   : > { %s2936_s4 = scalar_select %p2355_p7, 1, 0 }
  0x1c   : > { %s1848_s7 = sshll.u32 %s3001_s25, 1  ;;  %s40_s8 = sor.u32 %s39_s28, %s38_s6 }
  0x1d   : > { %s1849_s9 = sadd.s32 2, %s1848_s7  ;;  %p41_p8 = scmp.eq.s32.totalorder %s40_s8, 0 }
  0x1e   : > { %s71_s10 = ssub.s32 %s1847_s5, %s1849_s9  ;;  %s75_s24 = sadd.s32 1, %s2183_s14 }
  0x1f   : > { %s72_s11 = sor.u32 %s71_s10, %s38_s6  ;;  %p82_p10 = scmp.ne.s32.totalorder %s2183_s14, %s2179_s13 }
  0x20   : > { %s2364_s3 = scalar_select %p41_p8, %s2195_s17, %s43_s27  }
  0x21   : > { %p73_p9 = scmp.eq.s32.totalorder %s72_s11, 0  ;;  %p88_p11 = scmp.ne.s32.totalorder %s2179_s13, %s2175_s12 }
  0x22   : > { %2937 = sst [smem:[#allocation20_spill]] %s2364_s3  ;;  %p135_p12 = scmp.eq.s32.totalorder %s2321_s23, 3 }
  0x23   : > { %s2372_s30 = scalar_select %p73_p9, %s2183_s14, %s75_s24  }
  0x24   : > { %p2376_p13 = por %p82_p10, %p51_p2  ;;  %p2382_p0 = por %p88_p11, %p57_p6 }
  0x25   : > { %2938 = sst [smem:[#allocation21_spill]] %s2372_s30  ;;  %p2389_p4 = por %p135_p12, %p50_p1 }
  0x26   : > { %s2943_s12 = sadd.s32 4294967294, %s2215_s22   ;;  %p1814_p5 = scmp.ge.s32.totalorder %s2215_s22, 1 }
  0x27   : > { %s2941_s27 = scalar_select %p2389_p4, 1, 0 }
  0x28   : > { %p141_p8 = scmp.eq.s32.totalorder %s2943_s12, 3  ;;  %p148_p9 = scmp.lt.s32.totalorder %s2215_s22, 5 }
  0x29   : > { %2942 = sst [smem:[#allocation22_spill]] %s2941_s27  ;;  %p2944_p7 = scmp.ne.s32.totalorder %s2191_s16, %s2187_s15 }
  0x2a   : > { %p2404_p2 = pnand %p1814_p5, %p148_p9  ;;  %s2948_s2 = sld [smem:[#allocation24_spill]] }
  0x2b   : > { %p2400_p3 = por %p141_p8, %p2944_p7  ;;  %s2217_s10 = smov [#allocation9]  }
  0x2c   : > { %p1860_p1 = pneg %p2404_p2  ;;  %s162_s11 = sshll.u32 %s2217_s10, 4  ;;  %s163_s11 = int_to_ptr.vmem [resolvable:$true] %s162_s11 }
  0x2d   : > { %s2945_s24 = scalar_select %p2400_p3, 1, 0 }
  0x2e   : > { %p1861_p7 = pnand %p1860_p1, %p57_p6  ;;  %p1816_p10 = scmp.ge.s32.totalorder %s2215_s22, 4 }
  0x2f   : > { %2946 = sst [smem:[#allocation23_spill]] %s2945_s24  ;;  %p2949_p5 = scmp.ne.s32.totalorder (!%p1816_p10), %s2934_s29, 0 }
  0x30   : > { %s160_s9 = sshll.u32 %s2948_s2, 4  ;;  %169 = sbr.rel (%p1816_p10) target bundleno = 86 (0x56), region = 20  ;;  %s161_s9 = int_to_ptr.hbm [resolvable:$true] %s160_s9 }
  0x31   : > { %1863 = dma.hbm_to_vmem [thread:$0]  (!%p1861_p7), %s161_s9, 128, %s163_s11, [#allocation8]  }
  0x35   : > { %172 = sbr.rel (!%p2949_p5) target bundleno = 77 (0x4d), region = 24  ;;  %s173_s12 = sand.u32 (%p2949_p5), 1, %s2195_s17  }
  0x36   : > { %s1818_s6 = sshll.u32 (%p2949_p5), %s2207_s20, 2  ;;  %s1817_s8 = sshll.u32 (%p2949_p5), %s173_s12, 4 }
  0x37   : > { %s174_s2 = scalar_lea.sflag (%p2949_p5), [#allocation5], %s173_s12  ;;  %s177_s26 = scalar_lea.vmem (%p2949_p5), [#allocation4], %s1817_s8 }
  0x38   : > { %s1850_s10 = smul.u32 (%p2949_p5), 10, %s2211_s21  ;;  %s195_s25 = sshll.u32 (%p2949_p5), %s177_s26, 4  ;;  %s196_s25 = int_to_ptr.vmem [resolvable:$true] %s195_s25 }
  0x39   : > { %s2027_s12 = scalar_lea.hbm (%p2949_p5), %s2889_s0, 80 }
  0x3a   : > { %s188_s3 = sadd.s32 %s1850_s10, %s1818_s6 }
  0x3b   : > { %s1821_s30 = sshll.u32 %s188_s3, 2 }
  0x3c   : > { %s190_s11 = scalar_lea.hbm %s2889_s0, %s1821_s30 }
  0x3d   : > { %s193_s15 = sshll.u32 %s190_s11, 4  ;;  %s194_s15 = int_to_ptr.hbm [resolvable:$true] %s193_s15 }
  0x3e   : > { %s2016_s29 = sshra.s32 %s194_s15, 4  ;;  %s2017_s29 = int_to_ptr.hbm [resolvable:$true] %s2016_s29 }
  0x3f   : > { %s2023_s27 = scalar_lea.hbm %s2017_s29, 16 }
  0x40   : > { %p2024_p11 = scmp.ne.s32.totalorder %s2017_s29, %s2023_s27  ;;  %p2029_p12 = scmp.lt.s32.totalorder %s2027_s12, %s2023_s27 }
  0x42   : > { %p2031_p8 = pnand %p2029_p12, %p2024_p11 }
  0x44   : > { %2034 = shalt.err (!%p2031_p8)
}
  0x45   : > { %s2035_s26 = sshra.s32 %s196_s25, 4  ;;  %s2218_s24 = smov [#allocation4]   ;;  %s2036_s26 = int_to_ptr.vmem [resolvable:$true] %s2035_s26 }
  0x46   : > { %s2042_s3 = scalar_lea.vmem %s2036_s26, 16  ;;  %s2046_s30 = scalar_lea.vmem %s2218_s24, 32 }
  0x47   : > { %p2043_p9 = scmp.ne.s32.totalorder %s2036_s26, %s2042_s3  ;;  %p2048_p1 = scmp.lt.s32.totalorder %s2046_s30, %s2042_s3 }
  0x49   : > { %p2050_p7 = pnand %p2048_p1, %p2043_p9 }
  0x4b   : > { %2053 = shalt.err (!%p2050_p7)
}
  0x4c   : > { %198 = dma.hbm_to_vmem [thread:$0]  %s194_s15, 256, %s196_s25, %s174_s2  }
  0x4d PF: > { %s204_s17 = sand.u32 1, %s2183_s14   ;;  %s1825_s27 = sshll.u32 %s2207_s20, 2 }
  0x4e   : > { %s1824_s19 = sshll.u32 %s204_s17, 3  ;;  %s1726_s6 = smul.u32 10, %s2211_s21 }
  0x4f   : > { %s202_s8 = sand.u32 1, %s2215_s22   ;;  %s206_s9 = scalar_lea.vmem [#allocation7], %s1824_s19 }
  0x50   : > { %s1727_s10 = sadd.s32 %s1825_s27, %s1726_s6  ;;  %s219_s11 = sshll.u32 %s206_s9, 4  ;;  %s220_s11 = int_to_ptr.vmem [resolvable:$true] %s219_s11 }
  0x51   : > { %s1826_s29 = sshll.u32 %s1727_s10, 2  ;;  %s203_s25 = scalar_lea.sflag [#allocation8], %s202_s8 }
  0x52   : > { %s1729_s3 = scalar_lea.hbm %s2890_s1, %s1826_s29 }
  0x53   : > { %s1730_s2 = scalar_lea.hbm %s1729_s3, 16 }
  0x54   : > { %s217_s15 = sshll.u32 %s1730_s2, 4  ;;  %s218_s15 = int_to_ptr.hbm [resolvable:$true] %s217_s15 }
  0x55   : > { %1853 = dma.hbm_to_vmem [thread:$0]  (%p2376_p13), %s218_s15, 128, %s220_s11, %s203_s25  }
  0x56 PF: > { %228 = sbr.rel (%p2404_p2) target bundleno = 822 (0x336), region = 32  ;;  %s2439_s24 = sand.u32 (!%p2404_p2), 1, %s2191_s16  }
  0x57   : > { %s1828_s30 = sshll.u32 (!%p2404_p2), %s2439_s24, 4  ;;  %s231_s17 = scalar_lea.sflag (!%p2404_p2), [#allocation5], %s2439_s24 }
  0x58   : > { %s234_s19 = scalar_lea.vmem (!%p2404_p2), [#allocation4], %s1828_s30  ;;  %p2950_p10 = scmp.ne.s32.totalorder (!%p2404_p2), %s2936_s4, 0 }
  0x5b   : > { %2156 = dma.done.wait (%p2950_p10), %s231_s17, 256  }
  0x5c   : > { %2158 = vsyncadd (%p2950_p10), %s231_s17, 4294967040  ;;  %s240_s28 = sand.u32 1, %s2321_s23   ;;  %s242_s5 = sand.u32 1, %s2179_s13  }
  0x5d   : > { %s2449_s27 = sshll.u32 %s242_s5, 3  ;;  %s241_s6 = scalar_lea.sflag [#allocation8], %s240_s28 }
  0x5e   : > { %s244_s8 = scalar_lea.vmem [#allocation7], %s2449_s27 }
  0x5f   : > { %2160 = dma.done.wait (%p2382_p0), %s241_s6, 128  }
  0x60   : > { %2162 = vsyncadd (%p2382_p0), %s241_s6, 4294967168 }
  0x61   : > { %2164 = dma.done.wait (%p57_p6), [#allocation8], 128  }
  0x62   : > { %2166 = vsyncadd (%p57_p6), [#allocation8], 4294967168  ;;  %v2460_v0 = vld [vmem:[%s234_s19 + $0x8] sm:$0xff]  ;;  %v2462_v1 = vld [vmem:[%s234_s19] sm:$0xff]  ;;  %s2219_s23 = smov 127   ;;  %s2220_s4 = smov 126  }
  0x63   : > { %290 = vst [vmem:[#allocation2 + $0x8] sm:$0xff] %v2460_v0  ;;  %s2221_s7 = smov 118   ;;  %s2905_s10 = smov 117   ;;  %vm342_vm0 = vcmask 1031168   ;;  %vm319_vm1 = vcmask 1039360   ;;  %vm366_vm2 = vcmask 965632  }
  0x64   : > { %289 = vst [vmem:[#allocation2] sm:$0xff] %v2462_v1  ;;  %s2903_s9 = smov 116   ;;  %s2224_s11 = smov 108   ;;  %vm2918_vm3 = vcmask 957440   ;;  %vm2917_vm4 = vcmask 949248   ;;  %vm436_vm5 = vcmask 883712  }
  0x65   : > { %295 = vst [vmem:[#allocation1] ss:$2 sm:$0xff] %v2462_v1  ;;  %s2907_s29 = smov 107   ;;  %s2226_s12 = smov 106   ;;  %vm2919_vm6 = vcmask 875520   ;;  %vm483_vm7 = vcmask 867328  }
  0x66   : > { %s2227_s26 = smov 28   ;;  %s2228_s3 = smov 27   ;;  %vm507_vm8 = vcmask 228352   ;;  %vm530_vm9 = vcmask 220160   ;;  %vm554_vm10 = vcmask 211968   ;;  %vm577_vm11 = vcmask 146432  }
  0x67   : > { %s2229_s2 = smov 26   ;;  %s2230_s15 = smov 18   ;;  %vm601_vm12 = vcmask 138240   ;;  %vm624_vm13 = vcmask 130048   ;;  %vm648_vm14 = vcmask 64512   ;;  %vm671_vm15 = vcmask 56320  }
  0x68   : > { %s2231_s25 = smov 17   ;;  %s2232_s30 = smov 16  }
  0x69   : > { %s2233_s17 = smov 8   ;;  %s2234_s19 = smov 7  }
  0x6a   : > { %v303_v2 = vld [vmem:[#allocation2 + $0x8] sm:$0xf]  ;;  %s2235_s28 = smov 6   ;;  %s2236_s5 = smov 56  }
  0x6b   : > { %309 = vst [vmem:[#allocation1 + $0x11] ss:$2 sm:$0xff] %v303_v2  ;;  %v327_v5 = vld [vmem:[#allocation2 + $0x8] sm:$0xf]  ;;  %s2237_s6 = smov 55   ;;  %s2951_s27 = smov 46  }
  0x6c   : > { %v296_v3 = vld.sshfl [vmem:[#allocation1] sm:$0xff pattern:$0x75316420]  ;;  %v297_v4 = vld.sshfl [vmem:[#allocation1 + $0x8] sm:$0xff pattern:$0x75316420] }
  0x6d   : > { %307 = vst [vmem:[#allocation1 + $0x1] ss:$2 sm:$0xff] %v2462_v1  ;;  %v350_v9 = vld [vmem:[#allocation2 + $0x8] sm:$0xf] }
  0x6e   : > { %300 = vst [vmem:[#allocation3 + $0xb0] sm:$0xf] %v296_v3  ;;  %v374_v13 = vld [vmem:[#allocation2 + $0x8] sm:$0xf] }
  0x6f   : > { %301 = vst [vmem:[#allocation3] sm:$0xf] %v297_v4  ;;  %v397_v17 = vld [vmem:[#allocation2 + $0x8] sm:$0xf] }
  0x70   : > { %v421_v21 = vld [vmem:[#allocation2 + $0x8] sm:$0xf] }
  0x71   : > { %v444_v25 = vld [vmem:[#allocation2 + $0x8] sm:$0xf] }
  0x72   : > { %v312_v6 = vld.sshfl [vmem:[#allocation1 + $0x10] sm:$0xff pattern:$0x75316420] }
  0x73   : > { %317 = vrot.lane.b32.xlu1 %v312_v6, %s2219_s23  ;;  %332 = vst [vmem:[#allocation1 + $0x10] ss:$2 sm:$0xff] %v327_v5  ;;  %v468_v29 = vld [vmem:[#allocation2 + $0x8] sm:$0xf] }
  0x74   : > { %v310_v7 = vld.sshfl [vmem:[#allocation1] sm:$0xff pattern:$0x75316420]  ;;  %v311_v8 = vld.sshfl [vmem:[#allocation1 + $0x8] sm:$0xff pattern:$0x75316420] }
  0x75   : > { %313 = vrot.lane.b32.xlu0 %v310_v7, %s2219_s23  ;;  %330 = vst [vmem:[#allocation1] ss:$2 sm:$0xff] %v2462_v1  ;;  %v491_v33 = vld [vmem:[#allocation2 + $0x8] sm:$0xf] }
  0x76   : > { %v515_v37 = vld [vmem:[#allocation2 + $0x8] sm:$0xf] }
  0x77   : > { %v538_v41 = vld [vmem:[#allocation2 + $0x8] sm:$0xf] }
  0x78   : > { %v562_v45 = vld [vmem:[#allocation2 + $0x8] sm:$0xf] }
  0x79   : > { %v585_v49 = vld [vmem:[#allocation2 + $0x8] sm:$0xf] }
  0x7a   : > { %v335_v10 = vld.sshfl [vmem:[#allocation1 + $0x10] sm:$0xff pattern:$0x75316420] }
  0x7b   : > { %340 = vrot.lane.b32.xlu2 %v335_v10, %s2220_s4  ;;  %356 = vst [vmem:[#allocation1 + $0x11] ss:$2 sm:$0xff] %v350_v9  ;;  %v609_v53 = vld [vmem:[#allocation2 + $0x8] sm:$0xf] }
  0x7c   : > { %v333_v11 = vld.sshfl [vmem:[#allocation1] sm:$0xff pattern:$0x75316420]  ;;  %v334_v12 = vld.sshfl [vmem:[#allocation1 + $0x8] sm:$0xff pattern:$0x75316420] }
  0x7d   : > { %315 = vrot.lane.b32.xlu0 %v311_v8, %s2219_s23  ;;  %336 = vrot.lane.b32.xlu1 %v333_v11, %s2220_s4  ;;  %354 = vst [vmem:[#allocation1 + $0x1] ss:$2 sm:$0xff] %v2462_v1  ;;  %v632_v58 = vld [vmem:[#allocation2 + $0x8] sm:$0xf] }
  0x7e   : > { %v656_v2 = vld [vmem:[#allocation2 + $0x8] sm:$0xf] }
  0x7f   : > { %v679_v9 = vld [vmem:[#allocation2 + $0x8] sm:$0xf] }
  0x82   : > { %v359_v14 = vld.sshfl [vmem:[#allocation1 + $0x10] sm:$0xff pattern:$0x75316420] }
  0x83   : > { %338 = vrot.lane.b32.xlu2 %v334_v12, %s2220_s4  ;;  %379 = vst [vmem:[#allocation1 + $0x10] ss:$2 sm:$0xff] %v374_v13 }
  0x84   : > { %v358_v15 = vld.sshfl [vmem:[#allocation1 + $0x8] sm:$0xff pattern:$0x75316420]  ;;  %v357_v16 = vld.sshfl [vmem:[#allocation1] sm:$0xff pattern:$0x75316420] }
  0x85   : > { %362 = vrot.lane.b32.xlu1 %v358_v15, %s2221_s7  ;;  %360 = vrot.lane.b32.xlu0 %v357_v16, %s2221_s7  ;;  %377 = vst [vmem:[#allocation1] ss:$2 sm:$0xff] %v2462_v1 }
  0x8a   : > { %v382_v18 = vld.sshfl [vmem:[#allocation1 + $0x10] sm:$0xff pattern:$0x75316420] }
  0x8b   : > { %364 = vrot.lane.b32.xlu2 %v359_v14, %s2221_s7  ;;  %403 = vst [vmem:[#allocation1 + $0x11] ss:$2 sm:$0xff] %v397_v17 }
  0x8c   : > { %v381_v19 = vld.sshfl [vmem:[#allocation1 + $0x8] sm:$0xff pattern:$0x75316420]  ;;  %v380_v20 = vld.sshfl [vmem:[#allocation1] sm:$0xff pattern:$0x75316420] }
  0x8d   : > { %385 = vrot.lane.b32.xlu1 %v381_v19, %s2905_s10  ;;  %383 = vrot.lane.b32.xlu0 %v380_v20, %s2905_s10  ;;  %401 = vst [vmem:[#allocation1 + $0x1] ss:$2 sm:$0xff] %v2462_v1  ;;  %v2535_v19 = vld [vmem:[#allocation2 + $0x4] sm:$0xff]  ;;  %v703_v20 = vld [vmem:[#allocation2 + $0xc] sm:$0xf] }
  0x92   : > { %v406_v22 = vld.sshfl [vmem:[#allocation1 + $0x10] sm:$0xff pattern:$0x75316420] }
  0x93   : > { %387 = vrot.lane.b32.xlu2 %v382_v18, %s2905_s10  ;;  %426 = vst [vmem:[#allocation1 + $0x10] ss:$2 sm:$0xff] %v421_v21  ;;  %s2909_s10 = smov 46  }
  0x94   : > { %v405_v23 = vld.sshfl [vmem:[#allocation1 + $0x8] sm:$0xff pattern:$0x75316420]  ;;  %v404_v24 = vld.sshfl [vmem:[#allocation1] sm:$0xff pattern:$0x75316420] }
  0x95   : > { %409 = vrot.lane.b32.xlu1 %v405_v23, %s2903_s9  ;;  %407 = vrot.lane.b32.xlu0 %v404_v24, %s2903_s9  ;;  %424 = vst [vmem:[#allocation1] ss:$2 sm:$0xff] %v2462_v1 }
  0x9a   : > { %v429_v26 = vld.sshfl [vmem:[#allocation1 + $0x10] sm:$0xff pattern:$0x75316420] }
  0x9b   : > { %411 = vrot.lane.b32.xlu2 %v406_v22, %s2903_s9  ;;  %450 = vst [vmem:[#allocation1 + $0x11] ss:$2 sm:$0xff] %v444_v25  ;;  %s2238_s9 = smov 54  }
  0x9c   : > { %v428_v27 = vld.sshfl [vmem:[#allocation1 + $0x8] sm:$0xff pattern:$0x75316420]  ;;  %v427_v28 = vld.sshfl [vmem:[#allocation1] sm:$0xff pattern:$0x75316420] }
  0x9d   : > { %432 = vrot.lane.b32.xlu1 %v428_v27, %s2224_s11  ;;  %430 = vrot.lane.b32.xlu0 %v427_v28, %s2224_s11  ;;  %448 = vst [vmem:[#allocation1 + $0x1] ss:$2 sm:$0xff] %v2462_v1  ;;  %v726_v28 = vld [vmem:[#allocation2 + $0xc] sm:$0xf] }
  0xa2   : > { %v453_v30 = vld.sshfl [vmem:[#allocation1 + $0x10] sm:$0xff pattern:$0x75316420] }
  0xa3   : > { %434 = vrot.lane.b32.xlu2 %v429_v26, %s2224_s11  ;;  %473 = vst [vmem:[#allocation1 + $0x10] ss:$2 sm:$0xff] %v468_v29 }
  0xa4   : > { %v452_v31 = vld.sshfl [vmem:[#allocation1 + $0x8] sm:$0xff pattern:$0x75316420]  ;;  %v451_v32 = vld.sshfl [vmem:[#allocation1] sm:$0xff pattern:$0x75316420] }
  0xa5   : > { %456 = vrot.lane.b32.xlu1 %v452_v31, %s2907_s29  ;;  %454 = vrot.lane.b32.xlu0 %v451_v32, %s2907_s29  ;;  %471 = vst [vmem:[#allocation1] ss:$2 sm:$0xff] %v2462_v1 }
  0xaa   : > { %v476_v34 = vld.sshfl [vmem:[#allocation1 + $0x10] sm:$0xff pattern:$0x75316420] }
  0xab   : > { %458 = vrot.lane.b32.xlu2 %v453_v30, %s2907_s29  ;;  %497 = vst [vmem:[#allocation1 + $0x11] ss:$2 sm:$0xff] %v491_v33  ;;  %s2911_s29 = smov 45  }
  0xac   : > { %v475_v35 = vld.sshfl [vmem:[#allocation1 + $0x8] sm:$0xff pattern:$0x75316420]  ;;  %v474_v36 = vld.sshfl [vmem:[#allocation1] sm:$0xff pattern:$0x75316420] }
  0xad   : > { %479 = vrot.lane.b32.xlu1 %v475_v35, %s2226_s12  ;;  %477 = vrot.lane.b32.xlu0 %v474_v36, %s2226_s12  ;;  %495 = vst [vmem:[#allocation1 + $0x1] ss:$2 sm:$0xff] %v2462_v1 }
  0xb2   : > { %v500_v38 = vld.sshfl [vmem:[#allocation1 + $0x10] sm:$0xff pattern:$0x75316420] }
  0xb3   : > { %481 = vrot.lane.b32.xlu2 %v476_v34, %s2226_s12  ;;  %520 = vst [vmem:[#allocation1 + $0x10] ss:$2 sm:$0xff] %v515_v37  ;;  %v750_v37 = vld [vmem:[#allocation2 + $0xc] sm:$0xf] }
  0xb4   : > { %v499_v39 = vld.sshfl [vmem:[#allocation1 + $0x8] sm:$0xff pattern:$0x75316420]  ;;  %v498_v40 = vld.sshfl [vmem:[#allocation1] sm:$0xff pattern:$0x75316420] }
  0xb5   : > { %503 = vrot.lane.b32.xlu1 %v499_v39, %s2227_s26  ;;  %501 = vrot.lane.b32.xlu0 %v498_v40, %s2227_s26  ;;  %518 = vst [vmem:[#allocation1] ss:$2 sm:$0xff] %v2462_v1 }
  0xba   : > { %v523_v42 = vld.sshfl [vmem:[#allocation1 + $0x10] sm:$0xff pattern:$0x75316420] }
  0xbb   : > { %505 = vrot.lane.b32.xlu2 %v500_v38, %s2227_s26  ;;  %544 = vst [vmem:[#allocation1 + $0x11] ss:$2 sm:$0xff] %v538_v41 }
  0xbc   : > { %v522_v43 = vld.sshfl [vmem:[#allocation1 + $0x8] sm:$0xff pattern:$0x75316420]  ;;  %v521_v44 = vld.sshfl [vmem:[#allocation1] sm:$0xff pattern:$0x75316420] }
  0xbd   : > { %526 = vrot.lane.b32.xlu1 %v522_v43, %s2228_s3  ;;  %524 = vrot.lane.b32.xlu0 %v521_v44, %s2228_s3  ;;  %542 = vst [vmem:[#allocation1 + $0x1] ss:$2 sm:$0xff] %v2462_v1 }
  0xc2   : > { %v547_v46 = vld.sshfl [vmem:[#allocation1 + $0x10] sm:$0xff pattern:$0x75316420] }
  0xc3   : > { %528 = vrot.lane.b32.xlu2 %v523_v42, %s2228_s3  ;;  %567 = vst [vmem:[#allocation1 + $0x10] ss:$2 sm:$0xff] %v562_v45 }
  0xc4   : > { %v546_v47 = vld.sshfl [vmem:[#allocation1 + $0x8] sm:$0xff pattern:$0x75316420]  ;;  %v545_v48 = vld.sshfl [vmem:[#allocation1] sm:$0xff pattern:$0x75316420] }
  0xc5   : > { %550 = vrot.lane.b32.xlu1 %v546_v47, %s2229_s2  ;;  %548 = vrot.lane.b32.xlu0 %v545_v48, %s2229_s2  ;;  %565 = vst [vmem:[#allocation1] ss:$2 sm:$0xff] %v2462_v1 }
  0xca   : > { %v570_v50 = vld.sshfl [vmem:[#allocation1 + $0x10] sm:$0xff pattern:$0x75316420] }
  0xcb   : > { %552 = vrot.lane.b32.xlu2 %v547_v46, %s2229_s2  ;;  %591 = vst [vmem:[#allocation1 + $0x11] ss:$2 sm:$0xff] %v585_v49  ;;  %v773_v46 = vld [vmem:[#allocation2 + $0xc] sm:$0xf] }
  0xcc   : > { %v569_v51 = vld.sshfl [vmem:[#allocation1 + $0x8] sm:$0xff pattern:$0x75316420]  ;;  %v568_v52 = vld.sshfl [vmem:[#allocation1] sm:$0xff pattern:$0x75316420] }
  0xcd   : > { %573 = vrot.lane.b32.xlu1 %v569_v51, %s2230_s15  ;;  %571 = vrot.lane.b32.xlu0 %v568_v52, %s2230_s15  ;;  %589 = vst [vmem:[#allocation1 + $0x1] ss:$2 sm:$0xff] %v2462_v1 }
  0xd2   : > { %v594_v54 = vld.sshfl [vmem:[#allocation1 + $0x10] sm:$0xff pattern:$0x75316420] }
  0xd3   : > { %575 = vrot.lane.b32.xlu2 %v570_v50, %s2230_s15  ;;  %614 = vst [vmem:[#allocation1 + $0x10] ss:$2 sm:$0xff] %v609_v53 }
  0xd4   : > { %v593_v55 = vld.sshfl [vmem:[#allocation1 + $0x8] sm:$0xff pattern:$0x75316420]  ;;  %v592_v56 = vld.sshfl [vmem:[#allocation1] sm:$0xff pattern:$0x75316420] }
  0xd5   : > { %597 = vrot.lane.b32.xlu1 %v593_v55, %s2231_s25  ;;  %595 = vrot.lane.b32.xlu0 %v592_v56, %s2231_s25  ;;  %612 = vst [vmem:[#allocation1] ss:$2 sm:$0xff] %v2462_v1  ;;  %v341_v57 = vpop.permute.xlu2 %340  ;;  %v797_v55 = vld [vmem:[#allocation2 + $0xc] sm:$0xf] }
  0xda   : > { %v617_v59 = vld.sshfl [vmem:[#allocation1 + $0x10] sm:$0xff pattern:$0x75316420] }
  0xdb   : > { %599 = vrot.lane.b32.xlu2 %v594_v54, %s2231_s25  ;;  %638 = vst [vmem:[#allocation1 + $0x11] ss:$2 sm:$0xff] %v632_v58 }
  0xdc   : > { %v616_v60 = vld.sshfl [vmem:[#allocation1 + $0x8] sm:$0xff pattern:$0x75316420]  ;;  %v615_v61 = vld.sshfl [vmem:[#allocation1] sm:$0xff pattern:$0x75316420] }
  0xdd   : > { %620 = vrot.lane.b32.xlu1 %v616_v60, %s2232_s30  ;;  %618 = vrot.lane.b32.xlu0 %v615_v61, %s2232_s30  ;;  %636 = vst [vmem:[#allocation1 + $0x1] ss:$2 sm:$0xff] %v2462_v1  ;;  %v339_v62 = vpop.permute.xlu2 %338 }
  0xde   : > { %v344_v63 = vsel %vm342_vm0, %v339_v62, %v341_v57 }
  0xdf   : > { %348 = vst [vmem:[#allocation3 + $0x18] sm:$0xf] %v344_v63 }
  0xe2   : > { %v641_v3 = vld.sshfl [vmem:[#allocation1 + $0x10] sm:$0xff pattern:$0x75316420] }
  0xe3   : > { %622 = vrot.lane.b32.xlu2 %v617_v59, %s2232_s30  ;;  %661 = vst [vmem:[#allocation1 + $0x10] ss:$2 sm:$0xff] %v656_v2  ;;  %v820_v2 = vld [vmem:[#allocation2 + $0xc] sm:$0xf] }
  0xe4   : > { %v640_v4 = vld.sshfl [vmem:[#allocation1 + $0x8] sm:$0xff pattern:$0x75316420]  ;;  %v639_v5 = vld.sshfl [vmem:[#allocation1] sm:$0xff pattern:$0x75316420] }
  0xe5   : > { %644 = vrot.lane.b32.xlu1 %v640_v4, %s2233_s17  ;;  %642 = vrot.lane.b32.xlu0 %v639_v5, %s2233_s17  ;;  %v318_v6 = vpop.permute.xlu1 %317  ;;  %659 = vst [vmem:[#allocation1] ss:$2 sm:$0xff] %v2462_v1  ;;  %v365_v7 = vpop.permute.xlu2 %364 }
  0xe7   : > { %v314_v8 = vpop.permute.xlu0 %313 }
  0xea   : > { %v664_v10 = vld.sshfl [vmem:[#allocation1 + $0x10] sm:$0xff pattern:$0x75316420] }
  0xeb   : > { %646 = vrot.lane.b32.xlu2 %v641_v3, %s2233_s17  ;;  %685 = vst [vmem:[#allocation1 + $0x11] ss:$2 sm:$0xff] %v679_v9 }
  0xec   : > { %v663_v11 = vld.sshfl [vmem:[#allocation1 + $0x8] sm:$0xff pattern:$0x75316420]  ;;  %v662_v12 = vld.sshfl [vmem:[#allocation1] sm:$0xff pattern:$0x75316420] }
  0xed   : > { %667 = vrot.lane.b32.xlu1 %v663_v11, %s2234_s19  ;;  %665 = vrot.lane.b32.xlu0 %v662_v12, %s2234_s19  ;;  %683 = vst [vmem:[#allocation1 + $0x1] ss:$2 sm:$0xff] %v2462_v1  ;;  %v388_v13 = vpop.permute.xlu2 %387  ;;  %v844_v11 = vld [vmem:[#allocation2 + $0xc] sm:$0xf] }
  0xef   : > { %v316_v14 = vpop.permute.xlu0 %315  ;;  %v337_v15 = vpop.permute.xlu1 %336 }
  0xf0   : > { %v320_v16 = vsel %vm319_vm1, %v314_v8, %v316_v14  ;;  %v321_v17 = vsel %vm319_vm1, %v316_v14, %v318_v6  ;;  %v343_v18 = vsel %vm342_vm0, %v337_v15, %v339_v62 }
  0xf1   : > { %324 = vst [vmem:[#allocation3 + $0xb0] sm:$0xf0] %v320_v16 }
  0xf2   : > { %325 = vst [vmem:[#allocation3] sm:$0xf0] %v321_v17  ;;  %v688_v21 = vld.sshfl [vmem:[#allocation1 + $0x10] sm:$0xff pattern:$0x75316420] }
  0xf3   : > { %347 = vst [vmem:[#allocation3 + $0xd8] sm:$0xf] %v343_v18  ;;  %669 = vrot.lane.b32.xlu2 %v664_v10, %s2234_s19 }
  0xf4   : > { %v687_v22 = vld.sshfl [vmem:[#allocation1 + $0x8] sm:$0xff pattern:$0x75316420]  ;;  %v686_v1 = vld.sshfl [vmem:[#allocation1] sm:$0xff pattern:$0x75316420] }
  0xf5   : > { %691 = vrot.lane.b32.xlu1 %v687_v22, %s2235_s28  ;;  %689 = vrot.lane.b32.xlu0 %v686_v1, %s2235_s28  ;;  %706 = vst [vmem:[#allocation1] ss:$2 sm:$0xff] %v2535_v19  ;;  %v412_v23 = vpop.permute.xlu2 %411 }
  0xf6   : > { %708 = vst [vmem:[#allocation1 + $0x10] ss:$2 sm:$0xff] %v703_v20 }
  0xf7   : > { %v363_v24 = vpop.permute.xlu1 %362  ;;  %v361_v25 = vpop.permute.xlu0 %360 }
  0xf8   : > { %v368_v26 = vsel %vm366_vm2, %v363_v24, %v365_v7  ;;  %v367_v27 = vsel %vm366_vm2, %v361_v25, %v363_v24 }
  0xf9   : > { %372 = vst [vmem:[#allocation3 + $0x18] sm:$0xf0] %v368_v26 }
  0xfa   : > { %371 = vst [vmem:[#allocation3 + $0xd8] sm:$0xf0] %v367_v27 }
  0xfb   : > { %693 = vrot.lane.b32.xlu2 %v688_v21, %s2235_s28  ;;  %v867_v21 = vld [vmem:[#allocation2 + $0xc] sm:$0xf] }
  0xfc   : > { %v710_v29 = vld.sshfl [vmem:[#allocation1 + $0x8] sm:$0xff pattern:$0x75316420]  ;;  %v709_v30 = vld.sshfl [vmem:[#allocation1] sm:$0xff pattern:$0x75316420] }
  0xfd   : > { %714 = vrot.lane.b32.xlu1 %v710_v29, %s2236_s5  ;;  %712 = vrot.lane.b32.xlu0 %v709_v30, %s2236_s5  ;;  %730 = vst [vmem:[#allocation1 + $0x1] ss:$2 sm:$0xff] %v2535_v19  ;;  %v435_v31 = vpop.permute.xlu2 %434  ;;  %v711_v32 = vld.sshfl [vmem:[#allocation1 + $0x10] sm:$0xff pattern:$0x75316420] }
  0xfe   : > { %732 = vst [vmem:[#allocation1 + $0x11] ss:$2 sm:$0xff] %v726_v28  ;;  %v891_v29 = vld [vmem:[#allocation2 + $0xc] sm:$0xf] }
  0xff   : > { %v386_v33 = vpop.permute.xlu1 %385  ;;  %v384_v34 = vpop.permute.xlu0 %383 }
 0x100   : > { %v391_v35 = vsel %vm2918_vm3, %v386_v33, %v388_v13  ;;  %v390_v36 = vsel %vm2918_vm3, %v384_v34, %v386_v33  ;;  %v291_v34 = vld [vmem:[%s244_s8] sm:$0xff]  ;;  %vm2920_vm3 = vcmask 457728   ;;  %s2952_s8 = smov 45  }
 0x101   : > { %395 = vst [vmem:[#allocation3 + $0x68] sm:$0xf] %v391_v35 }
 0x102   : > { %394 = vst [vmem:[#allocation3 + $0x50] sm:$0xf] %v390_v36 }
 0x103   : > { %716 = vrot.lane.b32.xlu2 %v711_v32, %s2236_s5  ;;  %292 = vst [vmem:[#allocation2 + $0x10] sm:$0xff] %v291_v34 }
 0x104   : > { %v734_v38 = vld.sshfl [vmem:[#allocation1 + $0x8] sm:$0xff pattern:$0x75316420]  ;;  %v733_v39 = vld.sshfl [vmem:[#allocation1] sm:$0xff pattern:$0x75316420] }
 0x105   : > { %738 = vrot.lane.b32.xlu1 %v734_v38, %s2237_s6  ;;  %736 = vrot.lane.b32.xlu0 %v733_v39, %s2237_s6  ;;  %753 = vst [vmem:[#allocation1] ss:$2 sm:$0xff] %v2535_v19  ;;  %v459_v40 = vpop.permute.xlu2 %458  ;;  %v735_v41 = vld.sshfl [vmem:[#allocation1 + $0x10] sm:$0xff pattern:$0x75316420] }
 0x106   : > { %755 = vst [vmem:[#allocation1 + $0x10] ss:$2 sm:$0xff] %v750_v37 }
 0x107   : > { %v410_v42 = vpop.permute.xlu1 %409  ;;  %v408_v43 = vpop.permute.xlu0 %407 }
 0x108   : > { %v415_v44 = vsel %vm2917_vm4, %v410_v42, %v412_v23  ;;  %v414_v45 = vsel %vm2917_vm4, %v408_v43, %v410_v42  ;;  %vm695_vm4 = vcmask 48128  }
 0x109   : > { %419 = vst [vmem:[#allocation3 + $0x68] sm:$0xf0] %v415_v44 }
 0x10a   : > { %418 = vst [vmem:[#allocation3 + $0x50] sm:$0xf0] %v414_v45  ;;  %v1004_v42 = vld [vmem:[#allocation2 + $0x10] sm:$0xf] }
 0x10b   : > { %740 = vrot.lane.b32.xlu2 %v735_v41, %s2237_s6  ;;  %v1139_v34 = vld [vmem:[#allocation2 + $0x10] sm:$0xf] }
 0x10c   : > { %v757_v47 = vld.sshfl [vmem:[#allocation1 + $0x8] sm:$0xff pattern:$0x75316420]  ;;  %v756_v48 = vld.sshfl [vmem:[#allocation1] sm:$0xff pattern:$0x75316420] }
 0x10d   : > { %761 = vrot.lane.b32.xlu1 %v757_v47, %s2238_s9  ;;  %759 = vrot.lane.b32.xlu0 %v756_v48, %s2238_s9  ;;  %777 = vst [vmem:[#allocation1 + $0x1] ss:$2 sm:$0xff] %v2535_v19  ;;  %v482_v49 = vpop.permute.xlu2 %481  ;;  %v758_v50 = vld.sshfl [vmem:[#allocation1 + $0x10] sm:$0xff pattern:$0x75316420] }
 0x10e   : > { %779 = vst [vmem:[#allocation1 + $0x11] ss:$2 sm:$0xff] %v773_v46 }
 0x10f   : > { %v433_v51 = vpop.permute.xlu1 %432  ;;  %v431_v52 = vpop.permute.xlu0 %430 }
 0x110   : > { %v438_v53 = vsel %vm436_vm5, %v433_v51, %v435_v31  ;;  %v437_v54 = vsel %vm436_vm5, %v431_v52, %v433_v51  ;;  %v2601_v51 = vld [vmem:[#allocation3 + $0xb0] sm:$0xff] }
 0x111   : > { %442 = vst [vmem:[#allocation3 + $0x48] sm:$0xf] %v438_v53 }
 0x112   : > { %441 = vst [vmem:[#allocation3 + $0x30] sm:$0xf] %v437_v54 }
 0x113   : > { %763 = vrot.lane.b32.xlu2 %v758_v50, %s2238_s9  ;;  %v1027_v50 = vld [vmem:[#allocation2 + $0x10] sm:$0xf] }
 0x114   : > { %v781_v56 = vld.sshfl [vmem:[#allocation1 + $0x8] sm:$0xff pattern:$0x75316420]  ;;  %v780_v57 = vld.sshfl [vmem:[#allocation1] sm:$0xff pattern:$0x75316420] }
 0x115   : > { %785 = vrot.lane.b32.xlu1 %v781_v56, %s2909_s10  ;;  %783 = vrot.lane.b32.xlu0 %v780_v57, %s2909_s10  ;;  %800 = vst [vmem:[#allocation1] ss:$2 sm:$0xff] %v2535_v19  ;;  %v506_v58 = vpop.permute.xlu2 %505  ;;  %v782_v59 = vld.sshfl [vmem:[#allocation1 + $0x10] sm:$0xff pattern:$0x75316420] }
 0x116   : > { %802 = vst [vmem:[#allocation1 + $0x10] ss:$2 sm:$0xff] %v797_v55  ;;  %v2603_v55 = vld [vmem:[#allocation3] sm:$0xff] }
 0x117   : > { %v457_v60 = vpop.permute.xlu1 %456  ;;  %v455_v61 = vpop.permute.xlu0 %454 }
 0x118   : > { %v462_v62 = vsel %vm2919_vm6, %v457_v60, %v459_v40  ;;  %v461_v63 = vsel %vm2919_vm6, %v455_v61, %v457_v60  ;;  %v1049_v61 = vld [vmem:[#allocation2 + $0x10] sm:$0xf]  ;;  %vm2921_vm6 = vcmask 449536  }
 0x119   : > { %466 = vst [vmem:[#allocation3 + $0x48] sm:$0xf0] %v462_v62 }
 0x11a   : > { %465 = vst [vmem:[#allocation3 + $0x30] sm:$0xf0] %v461_v63 }
 0x11b   : > { %787 = vrot.lane.b32.xlu2 %v782_v59, %s2909_s10  ;;  %s2913_s10 = smov 44  }
 0x11c   : > { %v804_v3 = vld.sshfl [vmem:[#allocation1 + $0x8] sm:$0xff pattern:$0x75316420]  ;;  %v803_v4 = vld.sshfl [vmem:[#allocation1] sm:$0xff pattern:$0x75316420] }
 0x11d   : > { %808 = vrot.lane.b32.xlu1 %v804_v3, %s2911_s29  ;;  %806 = vrot.lane.b32.xlu0 %v803_v4, %s2911_s29  ;;  %824 = vst [vmem:[#allocation1 + $0x1] ss:$2 sm:$0xff] %v2535_v19  ;;  %v529_v5 = vpop.permute.xlu2 %528  ;;  %v805_v6 = vld.sshfl [vmem:[#allocation1 + $0x10] sm:$0xff pattern:$0x75316420] }
 0x11e   : > { %826 = vst [vmem:[#allocation1 + $0x11] ss:$2 sm:$0xff] %v820_v2 }
 0x11f   : > { %v480_v7 = vpop.permute.xlu1 %479  ;;  %v478_v8 = vpop.permute.xlu0 %477 }
 0x120   : > { %v485_v9 = vsel %vm483_vm7, %v480_v7, %v482_v49  ;;  %v484_v10 = vsel %vm483_vm7, %v478_v8, %v480_v7  ;;  %v1072_v8 = vld [vmem:[#allocation2 + $0x10] sm:$0xf] }
 0x121   : > { %489 = vst [vmem:[#allocation3 + $0x88] sm:$0xf] %v485_v9 }
 0x122   : > { %488 = vst [vmem:[#allocation3 + $0x80] sm:$0xf] %v484_v10 }
 0x123   : > { %810 = vrot.lane.b32.xlu2 %v805_v6, %s2911_s29  ;;  %s2915_s29 = smov 36  }
 0x124   : > { %v828_v12 = vld.sshfl [vmem:[#allocation1 + $0x8] sm:$0xff pattern:$0x75316420]  ;;  %v827_v13 = vld.sshfl [vmem:[#allocation1] sm:$0xff pattern:$0x75316420] }
 0x125   : > { %832 = vrot.lane.b32.xlu1 %v828_v12, %s2913_s10  ;;  %830 = vrot.lane.b32.xlu0 %v827_v13, %s2913_s10  ;;  %847 = vst [vmem:[#allocation1] ss:$2 sm:$0xff] %v2535_v19  ;;  %v553_v14 = vpop.permute.xlu2 %552  ;;  %v829_v15 = vld.sshfl [vmem:[#allocation1 + $0x10] sm:$0xff pattern:$0x75316420] }
 0x126   : > { %849 = vst [vmem:[#allocation1 + $0x10] ss:$2 sm:$0xff] %v844_v11 }
 0x127   : > { %v504_v16 = vpop.permute.xlu1 %503  ;;  %v502_v17 = vpop.permute.xlu0 %501 }
 0x128   : > { %v509_v18 = vsel %vm507_vm8, %v504_v16, %v506_v58  ;;  %v508_v20 = vsel %vm507_vm8, %v502_v17, %v504_v16  ;;  %v1094_v17 = vld [vmem:[#allocation2 + $0x10] sm:$0xf] }
 0x129   : > { %513 = vst [vmem:[#allocation3 + $0x88] sm:$0xf0] %v509_v18 }
 0x12a   : > { %512 = vst [vmem:[#allocation3 + $0x80] sm:$0xf0] %v508_v20 }
 0x12b   : > { %834 = vrot.lane.b32.xlu2 %v829_v15, %s2913_s10  ;;  %s2243_s10 = smov 35  }
 0x12c   : > { %v851_v22 = vld.sshfl [vmem:[#allocation1 + $0x8] sm:$0xff pattern:$0x75316420]  ;;  %v850_v1 = vld.sshfl [vmem:[#allocation1] sm:$0xff pattern:$0x75316420] }
 0x12d   : > { %855 = vrot.lane.b32.xlu1 %v851_v22, %s2915_s29  ;;  %853 = vrot.lane.b32.xlu0 %v850_v1, %s2915_s29  ;;  %871 = vst [vmem:[#allocation1 + $0x1] ss:$2 sm:$0xff] %v2535_v19  ;;  %v576_v23 = vpop.permute.xlu2 %575  ;;  %v852_v24 = vld.sshfl [vmem:[#allocation1 + $0x10] sm:$0xff pattern:$0x75316420] }
 0x12e   : > { %873 = vst [vmem:[#allocation1 + $0x11] ss:$2 sm:$0xff] %v867_v21 }
 0x12f   : > { %v527_v25 = vpop.permute.xlu1 %526  ;;  %v525_v26 = vpop.permute.xlu0 %524 }
 0x130   : > { %v532_v27 = vsel %vm530_vm9, %v527_v25, %v529_v5  ;;  %v531_v28 = vsel %vm530_vm9, %v525_v26, %v527_v25  ;;  %v1117_v26 = vld [vmem:[#allocation2 + $0x10] sm:$0xf] }
 0x131   : > { %536 = vst [vmem:[#allocation3 + $0x58] sm:$0xf] %v532_v27 }
 0x132   : > { %535 = vst [vmem:[#allocation3 + $0x8] sm:$0xf] %v531_v28 }
 0x133   : > { %857 = vrot.lane.b32.xlu2 %v852_v24, %s2915_s29  ;;  %s2244_s29 = smov 34  }
 0x134   : > { %v875_v30 = vld.sshfl [vmem:[#allocation1 + $0x8] sm:$0xff pattern:$0x75316420]  ;;  %v874_v31 = vld.sshfl [vmem:[#allocation1] sm:$0xff pattern:$0x75316420] }
 0x135   : > { %879 = vrot.lane.b32.xlu1 %v875_v30, %s2243_s10  ;;  %877 = vrot.lane.b32.xlu0 %v874_v31, %s2243_s10  ;;  %894 = vst [vmem:[#allocation1] ss:$2 sm:$0xff] %v2535_v19  ;;  %v600_v32 = vpop.permute.xlu2 %599  ;;  %v876_v33 = vld.sshfl [vmem:[#allocation1 + $0x10] sm:$0xff pattern:$0x75316420] }
 0x136   : > { %896 = vst [vmem:[#allocation1 + $0x10] ss:$2 sm:$0xff] %v891_v29 }
 0x137   : > { %v551_v35 = vpop.permute.xlu1 %550  ;;  %v549_v36 = vpop.permute.xlu0 %548 }
 0x138   : > { %v556_v37 = vsel %vm554_vm10, %v551_v35, %v553_v14  ;;  %v555_v38 = vsel %vm554_vm10, %v549_v36, %v551_v35 }
 0x139   : > { %560 = vst [vmem:[#allocation3 + $0x58] sm:$0xf0] %v556_v37 }
 0x13a   : > { %559 = vst [vmem:[#allocation3 + $0x8] sm:$0xf0] %v555_v38 }
 0x13b   : > { %881 = vrot.lane.b32.xlu2 %v876_v33, %s2243_s10 }
 0x13c   : > { %v898_v39 = vld.sshfl [vmem:[#allocation1 + $0x8] sm:$0xff pattern:$0x75316420]  ;;  %v897_v40 = vld.sshfl [vmem:[#allocation1] sm:$0xff pattern:$0x75316420] }
 0x13d   : > { %902 = vrot.lane.b32.xlu1 %v898_v39, %s2244_s29  ;;  %900 = vrot.lane.b32.xlu0 %v897_v40, %s2244_s29  ;;  %v623_v19 = vpop.permute.xlu2 %622  ;;  %996 = vst [vmem:[#allocation1] ss:$2 sm:$0xff] %v2460_v0  ;;  %v899_v41 = vld.sshfl [vmem:[#allocation1 + $0x10] sm:$0xff pattern:$0x75316420] }
 0x13e   : > { %1010 = vst [vmem:[#allocation1 + $0x11] ss:$2 sm:$0xff] %v1004_v42  ;;  %v1162_v42 = vld [vmem:[#allocation2 + $0x10] sm:$0xf] }
 0x13f   : > { %v574_v43 = vpop.permute.xlu1 %573  ;;  %v572_v44 = vpop.permute.xlu0 %571 }
 0x140   : > { %v579_v45 = vsel %vm577_vm11, %v574_v43, %v576_v23  ;;  %v578_v46 = vsel %vm577_vm11, %v572_v44, %v574_v43 }
 0x141   : > { %583 = vst [vmem:[#allocation3 + $0x90] sm:$0xf] %v579_v45 }
 0x142   : > { %582 = vst [vmem:[#allocation3 + $0x38] sm:$0xf] %v578_v46 }
 0x143   : > { %904 = vrot.lane.b32.xlu2 %v899_v41, %s2244_s29 }
 0x144   : > { %v997_v47 = vld.sshfl [vmem:[#allocation1] sm:$0xff pattern:$0x75316420]  ;;  %v998_v48 = vld.sshfl [vmem:[#allocation1 + $0x8] sm:$0xff pattern:$0x75316420] }
 0x145   : > { %v647_v49 = vpop.permute.xlu2 %646  ;;  %1008 = vst [vmem:[#allocation1 + $0x1] ss:$2 sm:$0xff] %v2460_v0  ;;  %v1013_v52 = vld.sshfl [vmem:[#allocation1 + $0x10] sm:$0xff pattern:$0x75316420] }
 0x146   : > { %1001 = vst [vmem:[#allocation3 + $0xb0] sm:$0xf] %v997_v47 }
 0x147   : > { %v598_v53 = vpop.permute.xlu1 %597  ;;  %v596_v54 = vpop.permute.xlu0 %595  ;;  %1032 = vst [vmem:[#allocation1 + $0x10] ss:$2 sm:$0xff] %v1027_v50 }
 0x148   : > { %v603_v56 = vsel %vm601_vm12, %v598_v53, %v600_v32  ;;  %v602_v57 = vsel %vm601_vm12, %v596_v54, %v598_v53  ;;  %1002 = vst [vmem:[#allocation3] sm:$0xf] %v998_v48 }
 0x149   : > { %607 = vst [vmem:[#allocation3 + $0x90] sm:$0xf0] %v603_v56 }
 0x14a   : > { %606 = vst [vmem:[#allocation3 + $0x38] sm:$0xf0] %v602_v57 }
 0x14b   : > { %1018 = vrot.lane.b32.xlu2 %v1013_v52, %s2219_s23  ;;  %v1184_v52 = vld [vmem:[#allocation2 + $0x10] sm:$0xf] }
 0x14c   : > { %v1012_v58 = vld.sshfl [vmem:[#allocation1 + $0x8] sm:$0xff pattern:$0x75316420]  ;;  %v1011_v59 = vld.sshfl [vmem:[#allocation1] sm:$0xff pattern:$0x75316420] }
 0x14d   : > { %1016 = vrot.lane.b32.xlu1 %v1012_v58, %s2219_s23  ;;  %1014 = vrot.lane.b32.xlu0 %v1011_v59, %s2219_s23  ;;  %v670_v60 = vpop.permute.xlu2 %669  ;;  %1030 = vst [vmem:[#allocation1] ss:$2 sm:$0xff] %v2460_v0  ;;  %v2659_v59 = vld [vmem:[#allocation2 + $0x8] sm:$0xff]  ;;  %s2953_s23 = smov 44  }
 0x14e   : > { %v1035_v62 = vld.sshfl [vmem:[#allocation1 + $0x10] sm:$0xff pattern:$0x75316420] }
 0x14f   : > { %v621_v63 = vpop.permute.xlu1 %620  ;;  %v619_v2 = vpop.permute.xlu0 %618  ;;  %1055 = vst [vmem:[#allocation1 + $0x11] ss:$2 sm:$0xff] %v1049_v61 }
 0x150   : > { %v626_v3 = vsel %vm624_vm13, %v621_v63, %v623_v19  ;;  %v625_v4 = vsel %vm624_vm13, %v619_v2, %v621_v63 }
 0x151   : > { %630 = vst [vmem:[#allocation3 + $0xb8] sm:$0xf] %v626_v3 }
 0x152   : > { %629 = vst [vmem:[#allocation3 + $0x78] sm:$0xf] %v625_v4 }
 0x153   : > { %1040 = vrot.lane.b32.xlu2 %v1035_v62, %s2220_s4 }
 0x154   : > { %v1034_v5 = vld.sshfl [vmem:[#allocation1 + $0x8] sm:$0xff pattern:$0x75316420]  ;;  %v1033_v6 = vld.sshfl [vmem:[#allocation1] sm:$0xff pattern:$0x75316420] }
 0x155   : > { %1038 = vrot.lane.b32.xlu1 %v1034_v5, %s2220_s4  ;;  %1036 = vrot.lane.b32.xlu0 %v1033_v6, %s2220_s4  ;;  %v694_v7 = vpop.permute.xlu2 %693  ;;  %1053 = vst [vmem:[#allocation1 + $0x1] ss:$2 sm:$0xff] %v2460_v0  ;;  %s2954_s4 = smov 36  }
 0x156   : > { %v1058_v9 = vld.sshfl [vmem:[#allocation1 + $0x10] sm:$0xff pattern:$0x75316420] }
 0x157   : > { %v645_v10 = vpop.permute.xlu1 %644  ;;  %v643_v11 = vpop.permute.xlu0 %642  ;;  %1077 = vst [vmem:[#allocation1 + $0x10] ss:$2 sm:$0xff] %v1072_v8 }
 0x158   : > { %v650_v12 = vsel %vm648_vm14, %v645_v10, %v647_v49  ;;  %v649_v13 = vsel %vm648_vm14, %v643_v11, %v645_v10 }
 0x159   : > { %654 = vst [vmem:[#allocation3 + $0xb8] sm:$0xf0] %v650_v12 }
 0x15a   : > { %653 = vst [vmem:[#allocation3 + $0x78] sm:$0xf0] %v649_v13 }
 0x15b   : > { %1063 = vrot.lane.b32.xlu2 %v1058_v9, %s2221_s7  ;;  %v1229_v9 = vld [vmem:[#allocation2 + $0x10] sm:$0xf] }
 0x15c   : > { %v1057_v14 = vld.sshfl [vmem:[#allocation1 + $0x8] sm:$0xff pattern:$0x75316420]  ;;  %v1056_v15 = vld.sshfl [vmem:[#allocation1] sm:$0xff pattern:$0x75316420] }
 0x15d   : > { %1061 = vrot.lane.b32.xlu1 %v1057_v14, %s2221_s7  ;;  %1059 = vrot.lane.b32.xlu0 %v1056_v15, %s2221_s7  ;;  %1075 = vst [vmem:[#allocation1] ss:$2 sm:$0xff] %v2460_v0  ;;  %v717_v16 = vpop.permute.xlu2 %716  ;;  %s2955_s7 = smov 107  }
 0x15e   : > { %v2623_v18 = vld.sshfl [vmem:[#allocation1 + $0x10] sm:$0xff pattern:$0x75316420] }
 0x15f   : > { %v668_v20 = vpop.permute.xlu1 %667  ;;  %v666_v21 = vpop.permute.xlu0 %665  ;;  %1100 = vst [vmem:[#allocation1 + $0x11] ss:$2 sm:$0xff] %v1094_v17  ;;  %v1252_v17 = vld [vmem:[#allocation2 + $0x10] sm:$0xf] }
 0x160   : > { %v673_v22 = vsel %vm671_vm15, %v668_v20, %v670_v60  ;;  %v672_v1 = vsel %vm671_vm15, %v666_v21, %v668_v20 }
 0x161   : > { %677 = vst [vmem:[#allocation3 + $0x28] sm:$0xf] %v673_v22 }
 0x162   : > { %676 = vst [vmem:[#allocation3 + $0x40] sm:$0xf] %v672_v1 }
 0x164   : > { %v2627_v23 = vld.sshfl [vmem:[#allocation1] sm:$0xff pattern:$0x75316420]  ;;  %v2629_v24 = vld.sshfl [vmem:[#allocation1 + $0x8] sm:$0xff pattern:$0x75316420] }
 0x165   : > { %v741_v25 = vpop.permute.xlu2 %740  ;;  %1098 = vst [vmem:[#allocation1 + $0x1] ss:$2 sm:$0xff] %v2460_v0 }
 0x166   : > { %v2632_v27 = vld.sshfl [vmem:[#allocation1 + $0x10] sm:$0xff pattern:$0x75316420] }
 0x167   : > { %v692_v28 = vpop.permute.xlu1 %691  ;;  %v690_v29 = vpop.permute.xlu0 %689  ;;  %1122 = vst [vmem:[#allocation1 + $0x10] ss:$2 sm:$0xff] %v1117_v26 }
 0x168   : > { %v697_v30 = vsel %vm695_vm4, %v692_v28, %v694_v7  ;;  %v696_v31 = vsel %vm695_vm4, %v690_v29, %v692_v28 }
 0x169   : > { %701 = vst [vmem:[#allocation3 + $0x28] sm:$0xf0] %v697_v30  ;;  %v1274_v30 = vld [vmem:[#allocation2 + $0x10] sm:$0xf] }
 0x16a   : > { %700 = vst [vmem:[#allocation3 + $0x40] sm:$0xf0] %v696_v31 }
 0x16c   : > { %v2636_v32 = vld.sshfl [vmem:[#allocation1] sm:$0xff pattern:$0x75316420]  ;;  %v2638_v33 = vld.sshfl [vmem:[#allocation1 + $0x8] sm:$0xff pattern:$0x75316420] }
 0x16d   : > { %1120 = vst [vmem:[#allocation1] ss:$2 sm:$0xff] %v2460_v0  ;;  %v764_v35 = vpop.permute.xlu2 %763 }
 0x16e   : > { %v1125_v36 = vld.sshfl [vmem:[#allocation1 + $0x10] sm:$0xff pattern:$0x75316420] }
 0x16f   : > { %v715_v37 = vpop.permute.xlu1 %714  ;;  %v713_v38 = vpop.permute.xlu0 %712  ;;  %1130 = vrot.lane.b32.xlu2 %v1125_v36, %s2224_s11  ;;  %1145 = vst [vmem:[#allocation1 + $0x11] ss:$2 sm:$0xff] %v1139_v34 }
 0x170   : > { %v720_v39 = vsel %vm2920_vm3, %v715_v37, %v717_v16  ;;  %v719_v40 = vsel %vm2920_vm3, %v713_v38, %v715_v37  ;;  %vm2922_vm3 = vcmask 441344  }
 0x171   : > { %724 = vst [vmem:[#allocation3 + $0x60] sm:$0xf] %v720_v39 }
 0x172   : > { %723 = vst [vmem:[#allocation3 + $0xc0] sm:$0xf] %v719_v40 }
 0x174   : > { %v1124_v19 = vld.sshfl [vmem:[#allocation1 + $0x8] sm:$0xff pattern:$0x75316420]  ;;  %v1123_v41 = vld.sshfl [vmem:[#allocation1] sm:$0xff pattern:$0x75316420] }
 0x175   : > { %1128 = vrot.lane.b32.xlu1 %v1124_v19, %s2224_s11  ;;  %1126 = vrot.lane.b32.xlu0 %v1123_v41, %s2224_s11  ;;  %1143 = vst [vmem:[#allocation1 + $0x1] ss:$2 sm:$0xff] %v2460_v0  ;;  %v788_v48 = vpop.permute.xlu2 %787  ;;  %v1297_v19 = vld [vmem:[#allocation2 + $0x10] sm:$0xf]  ;;  %s2980_s11 = sld [smem:[#allocation17_spill]] }
 0x176   : > { %v2647_v43 = vld.sshfl [vmem:[#allocation1 + $0x10] sm:$0xff pattern:$0x75316420] }
 0x177   : > { %v739_v44 = vpop.permute.xlu1 %738  ;;  %v737_v45 = vpop.permute.xlu0 %736  ;;  %1167 = vst [vmem:[#allocation1 + $0x10] ss:$2 sm:$0xff] %v1162_v42 }
 0x178   : > { %v744_v46 = vsel %vm2921_vm6, %v739_v44, %v741_v25  ;;  %v743_v47 = vsel %vm2921_vm6, %v737_v45, %v739_v44  ;;  %vm2923_vm6 = vcmask 375808  }
 0x179   : > { %748 = vst [vmem:[#allocation3 + $0x60] sm:$0xf0] %v744_v46 }
 0x17a   : > { %747 = vst [vmem:[#allocation3 + $0xc0] sm:$0xf0] %v743_v47 }
 0x17c   : > { %v2651_v49 = vld.sshfl [vmem:[#allocation1] sm:$0xff pattern:$0x75316420]  ;;  %v2653_v50 = vld.sshfl [vmem:[#allocation1 + $0x8] sm:$0xff pattern:$0x75316420] }
 0x17d   : > { %1165 = vst [vmem:[#allocation1] ss:$2 sm:$0xff] %v2460_v0  ;;  %v811_v60 = vpop.permute.xlu2 %810  ;;  %v1207_v0 = vld [vmem:[#allocation2 + $0x10] sm:$0xf] }
 0x17e   : > { %v1170_v53 = vld.sshfl [vmem:[#allocation1 + $0x10] sm:$0xff pattern:$0x75316420] }
 0x17f   : > { %v762_v54 = vpop.permute.xlu1 %761  ;;  %v760_v56 = vpop.permute.xlu0 %759  ;;  %1175 = vrot.lane.b32.xlu2 %v1170_v53, %s2226_s12  ;;  %1190 = vst [vmem:[#allocation1 + $0x11] ss:$2 sm:$0xff] %v1184_v52  ;;  %v1319_v53 = vld [vmem:[#allocation2 + $0x10] sm:$0xf] }
 0x180   : > { %v767_v57 = vsel %vm2922_vm3, %v762_v54, %v764_v35  ;;  %v766_v58 = vsel %vm2922_vm3, %v760_v56, %v762_v54  ;;  %vm2924_vm3 = vcmask 367616  }
 0x181   : > { %771 = vst [vmem:[#allocation3 + $0xa8] sm:$0xf] %v767_v57 }
 0x182   : > { %770 = vst [vmem:[#allocation3 + $0xd0] sm:$0xf] %v766_v58 }
 0x184   : > { %v1169_v61 = vld.sshfl [vmem:[#allocation1 + $0x8] sm:$0xff pattern:$0x75316420]  ;;  %v1168_v62 = vld.sshfl [vmem:[#allocation1] sm:$0xff pattern:$0x75316420] }
 0x185   : > { %1173 = vrot.lane.b32.xlu1 %v1169_v61, %s2226_s12  ;;  %1171 = vrot.lane.b32.xlu0 %v1168_v62, %s2226_s12  ;;  %1188 = vst [vmem:[#allocation1 + $0x1] ss:$2 sm:$0xff] %v2659_v59  ;;  %v835_v8 = vpop.permute.xlu2 %834 }
 0x186   : > { %v1193_v63 = vld.sshfl [vmem:[#allocation1 + $0x10] sm:$0xff pattern:$0x75316420] }
 0x187   : > { %v786_v2 = vpop.permute.xlu1 %785  ;;  %v784_v3 = vpop.permute.xlu0 %783  ;;  %1198 = vrot.lane.b32.xlu2 %v1193_v63, %s2227_s26  ;;  %1212 = vst [vmem:[#allocation1 + $0x10] ss:$2 sm:$0xff] %v1207_v0  ;;  %v1342_v63 = vld [vmem:[#allocation2 + $0x10] sm:$0xf] }
 0x188   : > { %v791_v4 = vsel %vm2923_vm6, %v786_v2, %v788_v48  ;;  %v790_v5 = vsel %vm2923_vm6, %v784_v3, %v786_v2  ;;  %vm2925_vm6 = vcmask 359424  }
 0x189   : > { %795 = vst [vmem:[#allocation3 + $0xa8] sm:$0xf0] %v791_v4 }
 0x18a   : > { %794 = vst [vmem:[#allocation3 + $0xd0] sm:$0xf0] %v790_v5 }
 0x18c   : > { %v1192_v6 = vld.sshfl [vmem:[#allocation1 + $0x8] sm:$0xff pattern:$0x75316420]  ;;  %v1191_v7 = vld.sshfl [vmem:[#allocation1] sm:$0xff pattern:$0x75316420] }
 0x18d   : > { %1196 = vrot.lane.b32.xlu1 %v1192_v6, %s2227_s26  ;;  %1194 = vrot.lane.b32.xlu0 %v1191_v7, %s2227_s26  ;;  %1210 = vst [vmem:[#allocation1] ss:$2 sm:$0xff] %v2659_v59  ;;  %v858_v20 = vpop.permute.xlu2 %857  ;;  %s1841_s26 = sshll.u32 %s2199_s18, 2 }
 0x18e   : > { %v1215_v10 = vld.sshfl [vmem:[#allocation1 + $0x10] sm:$0xff pattern:$0x75316420] }
 0x18f   : > { %v809_v11 = vpop.permute.xlu1 %808  ;;  %v807_v12 = vpop.permute.xlu0 %806  ;;  %1220 = vrot.lane.b32.xlu2 %v1215_v10, %s2228_s3  ;;  %1235 = vst [vmem:[#allocation1 + $0x11] ss:$2 sm:$0xff] %v1229_v9 }
 0x190   : > { %v814_v13 = vsel %vm2924_vm3, %v809_v11, %v811_v60  ;;  %v813_v14 = vsel %vm2924_vm3, %v807_v12, %v809_v11  ;;  %vm2926_vm3 = vcmask 293888   ;;  %v1364_v12 = vld [vmem:[#allocation2 + $0x10] sm:$0xf] }
 0x191   : > { %818 = vst [vmem:[#allocation3 + $0xa0] sm:$0xf] %v814_v13  ;;  %v935_v13 = vld [vmem:[#allocation3 + $0xa8] sm:$0xff] }
 0x192   : > { %817 = vst [vmem:[#allocation3 + $0x98] sm:$0xf] %v813_v14 }
 0x194   : > { %v1214_v15 = vld.sshfl [vmem:[#allocation1 + $0x8] sm:$0xff pattern:$0x75316420]  ;;  %v1213_v16 = vld.sshfl [vmem:[#allocation1] sm:$0xff pattern:$0x75316420] }
 0x195   : > { %1218 = vrot.lane.b32.xlu1 %v1214_v15, %s2228_s3  ;;  %1216 = vrot.lane.b32.xlu0 %v1213_v16, %s2228_s3  ;;  %1233 = vst [vmem:[#allocation1 + $0x1] ss:$2 sm:$0xff] %v2659_v59  ;;  %v882_v38 = vpop.permute.xlu2 %881  ;;  %v934_v15 = vld [vmem:[#allocation3 + $0xd0] sm:$0xff]  ;;  %s1842_s3 = sshll.u32 %s2980_s11, 3 }
 0x196   : > { %v1238_v21 = vld.sshfl [vmem:[#allocation1 + $0x10] sm:$0xff pattern:$0x75316420] }
 0x197   : > { %v833_v22 = vpop.permute.xlu1 %832  ;;  %v831_v1 = vpop.permute.xlu0 %830  ;;  %1243 = vrot.lane.b32.xlu2 %v1238_v21, %s2229_s2  ;;  %1257 = vst [vmem:[#allocation1 + $0x10] ss:$2 sm:$0xff] %v1252_v17 }
 0x198   : > { %v838_v25 = vsel %vm2925_vm6, %v833_v22, %v835_v8  ;;  %v837_v26 = vsel %vm2925_vm6, %v831_v1, %v833_v22  ;;  %vm2927_vm6 = vcmask 285696   ;;  %v932_v1 = vld [vmem:[#allocation3 + $0xc0] sm:$0xff] }
 0x199   : > { %842 = vst [vmem:[#allocation3 + $0xa0] sm:$0xf0] %v838_v25  ;;  %v931_v25 = vld [vmem:[#allocation3 + $0x28] sm:$0xff] }
 0x19a   : > { %841 = vst [vmem:[#allocation3 + $0x98] sm:$0xf0] %v837_v26  ;;  %v930_v26 = vld [vmem:[#allocation3 + $0x40] sm:$0xff] }
 0x19c   : > { %v1237_v28 = vld.sshfl [vmem:[#allocation1 + $0x8] sm:$0xff pattern:$0x75316420]  ;;  %v1236_v29 = vld.sshfl [vmem:[#allocation1] sm:$0xff pattern:$0x75316420] }
 0x19d   : > { %1241 = vrot.lane.b32.xlu1 %v1237_v28, %s2229_s2  ;;  %1239 = vrot.lane.b32.xlu0 %v1236_v29, %s2229_s2  ;;  %1255 = vst [vmem:[#allocation1] ss:$2 sm:$0xff] %v2659_v59  ;;  %v905_v47 = vpop.permute.xlu2 %904  ;;  %v929_v28 = vld [vmem:[#allocation3 + $0xb8] sm:$0xff]  ;;  %s1680_s2 = sadd.s32 %s1842_s3, %s1841_s26 }
 0x19e   : > { %v1260_v31 = vld.sshfl [vmem:[#allocation1 + $0x10] sm:$0xff pattern:$0x75316420] }
 0x19f   : > { %v856_v34 = vpop.permute.xlu1 %855  ;;  %v854_v35 = vpop.permute.xlu0 %853  ;;  %1265 = vrot.lane.b32.xlu2 %v1260_v31, %s2230_s15  ;;  %1280 = vst [vmem:[#allocation1 + $0x11] ss:$2 sm:$0xff] %v1274_v30  ;;  %v928_v31 = vld [vmem:[#allocation3 + $0x78] sm:$0xff] }
 0x1a0   : > { %v861_v36 = vsel %vm2926_vm3, %v856_v34, %v858_v20  ;;  %v860_v37 = vsel %vm2926_vm3, %v854_v35, %v856_v34  ;;  %vm906_vm3 = vcmask 277504   ;;  %v937_v7 = vld [vmem:[#allocation3 + $0xa0] sm:$0xff]  ;;  %v1387_v34 = vld [vmem:[#allocation2 + $0x14] sm:$0xf]  ;;  %v927_v35 = vld [vmem:[#allocation3 + $0x90] sm:$0xff] }
 0x1a1   : > { %865 = vst [vmem:[#allocation3 + $0x10] sm:$0xf] %v861_v36  ;;  %v936_v11 = vld [vmem:[#allocation3 + $0x98] sm:$0xff]  ;;  %v933_v20 = vld [vmem:[#allocation3 + $0x60] sm:$0xff] }
 0x1a2   : > { %864 = vst [vmem:[#allocation3 + $0x20] sm:$0xf] %v860_v37 }
 0x1a4   : > { %v1259_v39 = vld.sshfl [vmem:[#allocation1 + $0x8] sm:$0xff pattern:$0x75316420]  ;;  %v1258_v40 = vld.sshfl [vmem:[#allocation1] sm:$0xff pattern:$0x75316420] }
 0x1a5   : > { %1263 = vrot.lane.b32.xlu1 %v1259_v39, %s2230_s15  ;;  %1261 = vrot.lane.b32.xlu0 %v1258_v40, %s2230_s15  ;;  %1278 = vst [vmem:[#allocation1 + $0x1] ss:$2 sm:$0xff] %v2659_v59  ;;  %v1019_v61 = vpop.permute.xlu2 %1018 }
 0x1a6   : > { %v1283_v41 = vld.sshfl [vmem:[#allocation1 + $0x10] sm:$0xff pattern:$0x75316420] }
 0x1a7   : > { %v880_v42 = vpop.permute.xlu1 %879  ;;  %v878_v44 = vpop.permute.xlu0 %877  ;;  %1288 = vrot.lane.b32.xlu2 %v1283_v41, %s2231_s25  ;;  %1302 = vst [vmem:[#allocation1 + $0x10] ss:$2 sm:$0xff] %v1297_v19  ;;  %v925_v19 = vld [vmem:[#allocation3 + $0x58] sm:$0xff] }
 0x1a8   : > { %v885_v45 = vsel %vm2927_vm6, %v880_v42, %v882_v38  ;;  %v884_v46 = vsel %vm2927_vm6, %v878_v44, %v880_v42  ;;  %vm945_vm6 = vcmask 1043456   ;;  %v926_v38 = vld [vmem:[#allocation3 + $0x38] sm:$0xff]  ;;  %v924_v44 = vld [vmem:[#allocation3 + $0x8] sm:$0xff] }
 0x1a9   : > { %889 = vst [vmem:[#allocation3 + $0x10] sm:$0xf0] %v885_v45  ;;  %v917_v41 = vld [vmem:[#allocation3 + $0x18] sm:$0xff] }
 0x1aa   : > { %888 = vst [vmem:[#allocation3 + $0x20] sm:$0xf0] %v884_v46  ;;  %v916_v45 = vld [vmem:[#allocation3 + $0xd8] sm:$0xff]  ;;  %v923_v46 = vld [vmem:[#allocation3 + $0x88] sm:$0xff] }
 0x1ac   : > { %v1282_v48 = vld.sshfl [vmem:[#allocation1 + $0x8] sm:$0xff pattern:$0x75316420]  ;;  %v1281_v52 = vld.sshfl [vmem:[#allocation1] sm:$0xff pattern:$0x75316420] }
 0x1ad   : > { %1286 = vrot.lane.b32.xlu1 %v1282_v48, %s2231_s25  ;;  %1284 = vrot.lane.b32.xlu0 %v1281_v52, %s2231_s25  ;;  %1300 = vst [vmem:[#allocation1] ss:$2 sm:$0xff] %v2659_v59  ;;  %v1041_v10 = vpop.permute.xlu2 %1040  ;;  %v922_v48 = vld [vmem:[#allocation3 + $0x80] sm:$0xff]  ;;  %v921_v52 = vld [vmem:[#allocation3 + $0x48] sm:$0xff]  ;;  %s1843_s25 = sshll.u32 %s1680_s2, 3 }
 0x1ae   : > { %v1305_v54 = vld.sshfl [vmem:[#allocation1 + $0x10] sm:$0xff pattern:$0x75316420] }
 0x1af   : > { %v903_v56 = vpop.permute.xlu1 %902  ;;  %v901_v57 = vpop.permute.xlu0 %900  ;;  %1310 = vrot.lane.b32.xlu2 %v1305_v54, %s2232_s30  ;;  %1325 = vst [vmem:[#allocation1 + $0x11] ss:$2 sm:$0xff] %v1319_v53 }
 0x1b0   : > { %v908_v58 = vsel %vm906_vm3, %v903_v56, %v905_v47  ;;  %v907_v60 = vsel %vm906_vm3, %v901_v57, %v903_v56  ;;  %v939_v4 = vld [vmem:[#allocation3 + $0x10] sm:$0xff]  ;;  %v1409_v57 = vld [vmem:[#allocation2 + $0x14] sm:$0xf] }
 0x1b1   : > { %912 = vst [vmem:[#allocation3 + $0x70] sm:$0xf] %v908_v58  ;;  %v938_v6 = vld [vmem:[#allocation3 + $0x20] sm:$0xff]  ;;  %v2715_v47 = vld [vmem:[#allocation2 + $0xc] sm:$0xff]  ;;  %v919_v58 = vld [vmem:[#allocation3 + $0x68] sm:$0xff] }
 0x1b2   : > { %911 = vst [vmem:[#allocation3 + $0xc8] sm:$0xf] %v907_v60  ;;  %v920_v56 = vld [vmem:[#allocation3 + $0x30] sm:$0xff] }
 0x1b4   : > { %v1304_v62 = vld.sshfl [vmem:[#allocation1 + $0x8] sm:$0xff pattern:$0x75316420]  ;;  %v1303_v0 = vld.sshfl [vmem:[#allocation1] sm:$0xff pattern:$0x75316420] }
 0x1b5   : > { %1308 = vrot.lane.b32.xlu1 %v1304_v62, %s2232_s30  ;;  %1306 = vrot.lane.b32.xlu0 %v1303_v0, %s2232_s30  ;;  %1323 = vst [vmem:[#allocation1 + $0x1] ss:$2 sm:$0xff] %v2659_v59  ;;  %v1064_v36 = vpop.permute.xlu2 %1063  ;;  %v918_v62 = vld [vmem:[#allocation3 + $0x50] sm:$0xff] }
 0x1b6   : > { %v1328_v2 = vld.sshfl [vmem:[#allocation1 + $0x10] sm:$0xff pattern:$0x75316420] }
 0x1b7   : > { %1333 = vrot.lane.b32.xlu2 %v1328_v2, %s2233_s17  ;;  %1347 = vst [vmem:[#allocation1 + $0x10] ss:$2 sm:$0xff] %v1342_v63 }
 0x1b8   : > { %v941_v3 = vld [vmem:[#allocation3 + $0x70] sm:$0xf] }
 0x1b9   : > { %v940_v5 = vld [vmem:[#allocation3 + $0xc8] sm:$0xf]  ;;  %1834 = vmatpush.msk.msra.mxu1 %vm945_vm6, %v941_v3 }
 0x1ba   : > { %1832 = vmatpush.msk.msra.mxu0 %vm945_vm6, %v940_v5 }
 0x1bb   : > { %975 = vmatpush.msra.mxu1 %v939_v4 }
 0x1bc   : > { %955 = vmatpush.msra.mxu0 %v938_v6  ;;  %v1327_v8 = vld.sshfl [vmem:[#allocation1 + $0x8] sm:$0xff pattern:$0x75316420]  ;;  %v1326_v9 = vld.sshfl [vmem:[#allocation1] sm:$0xff pattern:$0x75316420] }
 0x1bd   : > { %976 = vmatpush.msra.mxu1 %v937_v7  ;;  %1331 = vrot.lane.b32.xlu1 %v1327_v8, %s2233_s17  ;;  %1345 = vst [vmem:[#allocation1] ss:$2 sm:$0xff] %v2659_v59  ;;  %v1432_v6 = vld [vmem:[#allocation2 + $0x14] sm:$0xf] }
 0x1be   : > { %956 = vmatpush.msra.mxu0 %v936_v11  ;;  %1329 = vrot.lane.b32.xlu0 %v1326_v9, %s2233_s17  ;;  %v1350_v14 = vld.sshfl [vmem:[#allocation1 + $0x10] sm:$0xff pattern:$0x75316420] }
 0x1bf   : > { %977 = vmatpush.msra.mxu1 %v935_v13  ;;  %v1017_v16 = vpop.permute.xlu1 %1016  ;;  %v1015_v17 = vpop.permute.xlu0 %1014  ;;  %1355 = vrot.lane.b32.xlu2 %v1350_v14, %s2234_s19  ;;  %1370 = vst [vmem:[#allocation1 + $0x11] ss:$2 sm:$0xff] %v1364_v12  ;;  %v1477_v14 = vld [vmem:[#allocation2 + $0x14] sm:$0xf] }
 0x1c0   : > { %957 = vmatpush.msra.mxu0 %v934_v15  ;;  %v1021_v21 = vsel %vm319_vm1, %v1017_v16, %v1019_v61  ;;  %v1020_v22 = vsel %vm319_vm1, %v1015_v17, %v1017_v16 }
 0x1c1   : > { %978 = vmatpush.msra.mxu1 %v933_v20  ;;  %1024 = vst [vmem:[#allocation3 + $0xb0] sm:$0xf0] %v1020_v22 }
 0x1c2   : > { %958 = vmatpush.msra.mxu0 %v932_v1  ;;  %1025 = vst [vmem:[#allocation3] sm:$0xf0] %v1021_v21 }
 0x1c3   : > { %979 = vmatpush.msra.mxu1 %v931_v25 }
 0x1c4   : > { %959 = vmatpush.msra.mxu0 %v930_v26  ;;  %v1349_v29 = vld.sshfl [vmem:[#allocation1 + $0x8] sm:$0xff pattern:$0x75316420]  ;;  %v1348_v30 = vld.sshfl [vmem:[#allocation1] sm:$0xff pattern:$0x75316420] }
 0x1c5   : > { %980 = vmatpush.msra.mxu1 %v929_v28  ;;  %1353 = vrot.lane.b32.xlu1 %v1349_v29, %s2234_s19  ;;  %1368 = vst [vmem:[#allocation1 + $0x1] ss:$2 sm:$0xff] %v2659_v59  ;;  %v1499_v26 = vld [vmem:[#allocation2 + $0x14] sm:$0xf] }
 0x1c6   : > { %960 = vmatpush.msra.mxu0 %v928_v31  ;;  %1351 = vrot.lane.b32.xlu0 %v1348_v30, %s2234_s19  ;;  %v1373_v37 = vld.sshfl [vmem:[#allocation1 + $0x10] sm:$0xff pattern:$0x75316420]  ;;  %s2982_s19 = sld [smem:[#allocation25_spill]] }
 0x1c7   : > { %981 = vmatpush.msra.mxu1 %v927_v35  ;;  %v1039_v39 = vpop.permute.xlu1 %1038  ;;  %v1037_v40 = vpop.permute.xlu0 %1036  ;;  %1378 = vrot.lane.b32.xlu2 %v1373_v37, %s2235_s28  ;;  %1392 = vst [vmem:[#allocation1 + $0x10] ss:$2 sm:$0xff] %v1387_v34  ;;  %v1522_v34 = vld [vmem:[#allocation2 + $0x14] sm:$0xf] }
 0x1c8   : > { %961 = vmatpush.msra.mxu0 %v926_v38  ;;  %v1043_v42 = vsel %vm342_vm0, %v1039_v39, %v1041_v10  ;;  %v1042_v59 = vsel %vm342_vm0, %v1037_v40, %v1039_v39  ;;  %vm2958_vm0 = vcmask 457728  }
 0x1c9   : > { %982 = vmatpush.msra.mxu1 %v925_v19  ;;  %1047 = vst [vmem:[#allocation3 + $0x18] sm:$0xf] %v1043_v42  ;;  %v1131_v61 = vpop.permute.xlu2 %1130  ;;  %v1544_v42 = vld [vmem:[#allocation2 + $0x14] sm:$0xf]  ;;  %vm2959_vm1 = vmmov %vm2958_vm0 }
 0x1ca   : > { %962 = vmatpush.msra.mxu0 %v924_v44  ;;  %1046 = vst [vmem:[#allocation3 + $0xd8] sm:$0xf] %v1042_v59 }
 0x1cb   : > { %983 = vmatpush.msra.mxu1 %v923_v46 }
 0x1cc   : > { %963 = vmatpush.msra.mxu0 %v922_v48  ;;  %v1372_v53 = vld.sshfl [vmem:[#allocation1 + $0x8] sm:$0xff pattern:$0x75316420]  ;;  %v1371_v54 = vld.sshfl [vmem:[#allocation1] sm:$0xff pattern:$0x75316420] }
 0x1cd   : > { %984 = vmatpush.msra.mxu1 %v921_v52  ;;  %1376 = vrot.lane.b32.xlu1 %v1372_v53, %s2235_s28  ;;  %1390 = vst [vmem:[#allocation1] ss:$2 sm:$0xff] %v2715_v47 }
 0x1ce   : > { %964 = vmatpush.msra.mxu0 %v920_v56  ;;  %1374 = vrot.lane.b32.xlu0 %v1371_v54, %s2235_s28  ;;  %v1395_v60 = vld.sshfl [vmem:[#allocation1 + $0x10] sm:$0xff pattern:$0x75316420]  ;;  %v1567_v56 = vld [vmem:[#allocation2 + $0x14] sm:$0xf]  ;;  %s2983_s28 = smov %s2982_s19 }
 0x1cf   : > { %985 = vmatpush.msra.mxu1 %v919_v58  ;;  %v1062_v0 = vpop.permute.xlu1 %1061  ;;  %v1060_v63 = vpop.permute.xlu0 %1059  ;;  %1400 = vrot.lane.b32.xlu2 %v1395_v60, %s2236_s5  ;;  %1415 = vst [vmem:[#allocation1 + $0x11] ss:$2 sm:$0xff] %v1409_v57 }
 0x1d0   : > { %965 = vmatpush.msra.mxu0 %v918_v62  ;;  %v1066_v2 = vsel %vm366_vm2, %v1062_v0, %v1064_v36  ;;  %v1065_v3 = vsel %vm366_vm2, %v1060_v63, %v1062_v0  ;;  %vm2960_vm2 = vcmask 449536  }
 0x1d1   : > { %986 = vmatpush.msra.mxu1 %v917_v41  ;;  %1070 = vst [vmem:[#allocation3 + $0x18] sm:$0xf0] %v1066_v2 }
 0x1d2   : > { %966 = vmatpush.msra.mxu0 %v916_v45  ;;  %1069 = vst [vmem:[#allocation3 + $0xd8] sm:$0xf0] %v1065_v3 }
 0x1d3   : > { %987 = vmatpush.msra.mxu1 %v2603_v55 }
 0x1d4   : > { %967 = vmatpush.msra.mxu0 %v2601_v51  ;;  %v1394_v4 = vld.sshfl [vmem:[#allocation1 + $0x8] sm:$0xff pattern:$0x75316420]  ;;  %v1393_v5 = vld.sshfl [vmem:[#allocation1] sm:$0xff pattern:$0x75316420] }
 0x1d5   : > { %1398 = vrot.lane.b32.xlu1 %v1394_v4, %s2236_s5  ;;  %1413 = vst [vmem:[#allocation1 + $0x1] ss:$2 sm:$0xff] %v2715_v47  ;;  %v1454_v51 = vld [vmem:[#allocation2 + $0x14] sm:$0xf] }
 0x1d6   : > { %1396 = vrot.lane.b32.xlu0 %v1393_v5, %s2236_s5  ;;  %v1418_v7 = vld.sshfl [vmem:[#allocation1 + $0x10] sm:$0xff pattern:$0x75316420]  ;;  %s1682_s5 = scalar_lea.hbm %s2982_s19, %s1843_s25 }
 0x1d7   : > { %1423 = vrot.lane.b32.xlu2 %v1418_v7, %s2237_s6  ;;  %1437 = vst [vmem:[#allocation1 + $0x10] ss:$2 sm:$0xff] %v1432_v6 }
 0x1d9   : > { %v1176_v8 = vpop.permute.xlu2 %1175 }
 0x1dc   : > { %v1417_v9 = vld.sshfl [vmem:[#allocation1 + $0x8] sm:$0xff pattern:$0x75316420]  ;;  %v1416_v10 = vld.sshfl [vmem:[#allocation1] sm:$0xff pattern:$0x75316420] }
 0x1dd   : > { %1421 = vrot.lane.b32.xlu1 %v1417_v9, %s2237_s6  ;;  %1435 = vst [vmem:[#allocation1] ss:$2 sm:$0xff] %v2715_v47 }
 0x1de   : > { %1419 = vrot.lane.b32.xlu0 %v1416_v10, %s2237_s6  ;;  %v1440_v55 = vld.sshfl [vmem:[#allocation1 + $0x10] sm:$0xff pattern:$0x75316420] }
 0x1df   : > { %1445 = vrot.lane.b32.xlu2 %v1440_v55, %s2238_s9  ;;  %1460 = vst [vmem:[#allocation1 + $0x11] ss:$2 sm:$0xff] %v1454_v51 }
 0x1e1   : > { %v1199_v11 = vpop.permute.xlu2 %1198 }
 0x1e4   : > { %v1439_v12 = vld.sshfl [vmem:[#allocation1 + $0x8] sm:$0xff pattern:$0x75316420]  ;;  %v1438_v13 = vld.sshfl [vmem:[#allocation1] sm:$0xff pattern:$0x75316420] }
 0x1e5   : > { %1443 = vrot.lane.b32.xlu1 %v1439_v12, %s2238_s9  ;;  %1458 = vst [vmem:[#allocation1 + $0x1] ss:$2 sm:$0xff] %v2715_v47 }
 0x1e6   : > { %1441 = vrot.lane.b32.xlu0 %v1438_v13, %s2238_s9  ;;  %v1463_v15 = vld.sshfl [vmem:[#allocation1 + $0x10] sm:$0xff pattern:$0x75316420]  ;;  %s2957_s9 = smov 116  }
 0x1e7   : > { %v1129_v16 = vpop.permute.xlu1 %1128  ;;  %v1127_v17 = vpop.permute.xlu0 %1126  ;;  %1468 = vrot.lane.b32.xlu2 %v1463_v15, %s2951_s27  ;;  %1482 = vst [vmem:[#allocation1 + $0x10] ss:$2 sm:$0xff] %v1477_v14 }
 0x1e8   : > { %v1133_v20 = vsel %vm436_vm5, %v1129_v16, %v1131_v61  ;;  %v1132_v21 = vsel %vm436_vm5, %v1127_v17, %v1129_v16 }
 0x1e9   : > { %1137 = vst [vmem:[#allocation3 + $0x48] sm:$0xf] %v1133_v20  ;;  %v1221_v22 = vpop.permute.xlu2 %1220 }
 0x1ea   : > { %1136 = vst [vmem:[#allocation3 + $0x30] sm:$0xf] %v1132_v21 }
 0x1ec   : > { %v1462_v1 = vld.sshfl [vmem:[#allocation1 + $0x8] sm:$0xff pattern:$0x75316420]  ;;  %v1461_v25 = vld.sshfl [vmem:[#allocation1] sm:$0xff pattern:$0x75316420] }
 0x1ed   : > { %1466 = vrot.lane.b32.xlu1 %v1462_v1, %s2951_s27  ;;  %1480 = vst [vmem:[#allocation1] ss:$2 sm:$0xff] %v2715_v47 }
 0x1ee   : > { %1464 = vrot.lane.b32.xlu0 %v1461_v25, %s2951_s27  ;;  %v1485_v28 = vld.sshfl [vmem:[#allocation1 + $0x10] sm:$0xff pattern:$0x75316420]  ;;  %s1686_s27 = sshll.u32 %s1682_s5, 4  ;;  %s1687_s27 = int_to_ptr.hbm [resolvable:$true] %s1686_s27 }
 0x1ef   : > { %1490 = vrot.lane.b32.xlu2 %v1485_v28, %s2952_s8  ;;  %1505 = vst [vmem:[#allocation1 + $0x11] ss:$2 sm:$0xff] %v1499_v26 }
 0x1f1   : > { %v1244_v29 = vpop.permute.xlu2 %1243 }
 0x1f4   : > { %v1484_v30 = vld.sshfl [vmem:[#allocation1 + $0x8] sm:$0xff pattern:$0x75316420]  ;;  %v1483_v31 = vld.sshfl [vmem:[#allocation1] sm:$0xff pattern:$0x75316420] }
 0x1f5   : > { %1488 = vrot.lane.b32.xlu1 %v1484_v30, %s2952_s8  ;;  %1503 = vst [vmem:[#allocation1 + $0x1] ss:$2 sm:$0xff] %v2715_v47 }
 0x1f6   : > { %1486 = vrot.lane.b32.xlu0 %v1483_v31, %s2952_s8  ;;  %v1508_v35 = vld.sshfl [vmem:[#allocation1 + $0x10] sm:$0xff pattern:$0x75316420]  ;;  %s1669_s8 = scalar_lea.sflag [#allocation6], %s2439_s24 }
 0x1f7   : > { %v1174_v36 = vpop.permute.xlu1 %1173  ;;  %v1172_v37 = vpop.permute.xlu0 %1171  ;;  %1513 = vrot.lane.b32.xlu2 %v1508_v35, %s2953_s23  ;;  %1527 = vst [vmem:[#allocation1 + $0x10] ss:$2 sm:$0xff] %v1522_v34 }
 0x1f8   : > { %v1178_v38 = vsel %vm483_vm7, %v1174_v36, %v1176_v8  ;;  %v1177_v39 = vsel %vm483_vm7, %v1172_v37, %v1174_v36  ;;  %vm2961_vm7 = vmmov %vm2960_vm2 }
 0x1f9   : > { %1182 = vst [vmem:[#allocation3 + $0x88] sm:$0xf] %v1178_v38  ;;  %v1266_v40 = vpop.permute.xlu2 %1265 }
 0x1fa   : > { %1181 = vst [vmem:[#allocation3 + $0x80] sm:$0xf] %v1177_v39 }
 0x1fc   : > { %v1507_v19 = vld.sshfl [vmem:[#allocation1 + $0x8] sm:$0xff pattern:$0x75316420]  ;;  %v1506_v41 = vld.sshfl [vmem:[#allocation1] sm:$0xff pattern:$0x75316420] }
 0x1fd   : > { %1511 = vrot.lane.b32.xlu1 %v1507_v19, %s2953_s23  ;;  %1525 = vst [vmem:[#allocation1] ss:$2 sm:$0xff] %v2715_v47 }
 0x1fe   : > { %1509 = vrot.lane.b32.xlu0 %v1506_v41, %s2953_s23  ;;  %v1530_v59 = vld.sshfl [vmem:[#allocation1 + $0x10] sm:$0xff pattern:$0x75316420]  ;;  %s2097_s23 = sshra.s32 %s1687_s27, 4  ;;  %s2098_s23 = int_to_ptr.hbm [resolvable:$true] %s2097_s23 }
 0x1ff   : > { %v1197_v44 = vpop.permute.xlu1 %1196  ;;  %v1195_v45 = vpop.permute.xlu0 %1194  ;;  %1535 = vrot.lane.b32.xlu2 %v1530_v59, %s2954_s4  ;;  %1550 = vst [vmem:[#allocation1 + $0x11] ss:$2 sm:$0xff] %v1544_v42  ;;  %s2099_s18 = scalar_lea.hbm %s2098_s23, 32  ;;  %p2104_p2 = scmp.lt.s32.totalorder %s2098_s23, %s2983_s28 }
 0x200   : > { %v1201_v46 = vsel %vm507_vm8, %v1197_v44, %v1199_v11  ;;  %v1200_v48 = vsel %vm507_vm8, %v1195_v45, %v1197_v44  ;;  %p2100_p6 = scmp.ne.s32.totalorder %s2098_s23, %s2099_s18 }
 0x201   : > { %1205 = vst [vmem:[#allocation3 + $0x88] sm:$0xf0] %v1201_v46  ;;  %v1289_v52 = vpop.permute.xlu2 %1288 }
 0x202   : > { %1204 = vst [vmem:[#allocation3 + $0x80] sm:$0xf0] %v1200_v48  ;;  %p2101_p13 = pnand %p2100_p6, %p2389_p4 }
 0x204   : > { %v1529_v53 = vld.sshfl [vmem:[#allocation1 + $0x8] sm:$0xff pattern:$0x75316420]  ;;  %v1528_v54 = vld.sshfl [vmem:[#allocation1] sm:$0xff pattern:$0x75316420]  ;;  %p2102_p0 = pneg %p2101_p13 }
 0x205   : > { %1533 = vrot.lane.b32.xlu1 %v1529_v53, %s2954_s4  ;;  %1548 = vst [vmem:[#allocation1 + $0x1] ss:$2 sm:$0xff] %v2715_v47 }
 0x206   : > { %1531 = vrot.lane.b32.xlu0 %v1528_v54, %s2954_s4  ;;  %v1553_v57 = vld.sshfl [vmem:[#allocation1 + $0x10] sm:$0xff pattern:$0x75316420] }
 0x207   : > { %v1219_v58 = vpop.permute.xlu1 %1218  ;;  %v1217_v60 = vpop.permute.xlu0 %1216  ;;  %1558 = vrot.lane.b32.xlu2 %v1553_v57, %s2243_s10  ;;  %1572 = vst [vmem:[#allocation1 + $0x10] ss:$2 sm:$0xff] %v1567_v56 }
 0x208   : > { %v1223_v61 = vsel %vm530_vm9, %v1219_v58, %v1221_v22  ;;  %v1222_v62 = vsel %vm530_vm9, %v1217_v60, %v1219_v58  ;;  %vm2964_vm9 = vcmask 375808  }
 0x209   : > { %1227 = vst [vmem:[#allocation3 + $0x58] sm:$0xf] %v1223_v61  ;;  %v1311_v0 = vpop.permute.xlu2 %1310 }
 0x20a   : > { %1226 = vst [vmem:[#allocation3 + $0x8] sm:$0xf] %v1222_v62 }
 0x20c   : > { %v1552_v63 = vld.sshfl [vmem:[#allocation1 + $0x8] sm:$0xff pattern:$0x75316420]  ;;  %v1551_v2 = vld.sshfl [vmem:[#allocation1] sm:$0xff pattern:$0x75316420] }
 0x20d   : > { %1556 = vrot.lane.b32.xlu1 %v1552_v63, %s2243_s10  ;;  %1570 = vst [vmem:[#allocation1] ss:$2 sm:$0xff] %v2715_v47 }
 0x20e   : > { %1554 = vrot.lane.b32.xlu0 %v1551_v2, %s2243_s10  ;;  %v1575_v3 = vld.sshfl [vmem:[#allocation1 + $0x10] sm:$0xff pattern:$0x75316420]  ;;  %s2956_s10 = smov 117  }
 0x20f   : > { %v1242_v4 = vpop.permute.xlu1 %1241  ;;  %v1240_v5 = vpop.permute.xlu0 %1239  ;;  %1580 = vrot.lane.b32.xlu2 %v1575_v3, %s2244_s29 }
 0x210   : > { %v1246_v6 = vsel %vm554_vm10, %v1242_v4, %v1244_v29  ;;  %v1245_v7 = vsel %vm554_vm10, %v1240_v5, %v1242_v4  ;;  %vm2965_vm10 = vmmov %vm2964_vm9 }
 0x211   : > { %1250 = vst [vmem:[#allocation3 + $0x58] sm:$0xf0] %v1246_v6  ;;  %v1334_v8 = vpop.permute.xlu2 %1333 }
 0x212   : > { %1249 = vst [vmem:[#allocation3 + $0x8] sm:$0xf0] %v1245_v7 }
 0x214   : > { %v1574_v9 = vld.sshfl [vmem:[#allocation1 + $0x8] sm:$0xff pattern:$0x75316420]  ;;  %v1573_v10 = vld.sshfl [vmem:[#allocation1] sm:$0xff pattern:$0x75316420] }
 0x215   : > { %1578 = vrot.lane.b32.xlu1 %v1574_v9, %s2244_s29 }
 0x216   : > { %1576 = vrot.lane.b32.xlu0 %v1573_v10, %s2244_s29  ;;  %s1831_s29 = sshll.u32 %s2439_s24, 5 }
 0x217   : > { %v1264_v47 = vpop.permute.xlu1 %1263  ;;  %v1262_v51 = vpop.permute.xlu0 %1261  ;;  %1153 = vrot.lane.b32.xlu2 %v2647_v43, %s2955_s7  ;;  %s277_s12 = scalar_lea.vmem [#allocation10], %s1831_s29 }
 0x218   : > { %v1268_v55 = vsel %vm577_vm11, %v1264_v47, %v1266_v40  ;;  %v1267_v11 = vsel %vm577_vm11, %v1262_v51, %v1264_v47  ;;  %vm2966_vm11 = vcmask 367616   ;;  %s1684_s6 = sshll.u32 %s277_s12, 4  ;;  %s1685_s6 = int_to_ptr.vmem [resolvable:$true] %s1684_s6 }
 0x219   : > { %1272 = vst [vmem:[#allocation3 + $0x90] sm:$0xf] %v1268_v55  ;;  %v1356_v12 = vpop.permute.xlu2 %1355 }
 0x21a   : > { %1271 = vst [vmem:[#allocation3 + $0x38] sm:$0xf] %v1267_v11 }
 0x21d   : > { %1151 = vrot.lane.b32.xlu1 %v2653_v50, %s2955_s7 }
 0x21e   : > { %1149 = vrot.lane.b32.xlu0 %v2651_v49, %s2955_s7 }
 0x21f   : > { %v1287_v13 = vpop.permute.xlu1 %1286  ;;  %v1285_v14 = vpop.permute.xlu0 %1284  ;;  %1085 = vrot.lane.b32.xlu2 %v2623_v18, %s2956_s10 }
 0x220   : > { %v1291_v43 = vsel %vm601_vm12, %v1287_v13, %v1289_v52  ;;  %v1290_v15 = vsel %vm601_vm12, %v1285_v14, %v1287_v13  ;;  %vm2967_vm12 = vmmov %vm2966_vm11 }
 0x221   : > { %1295 = vst [vmem:[#allocation3 + $0x90] sm:$0xf0] %v1291_v43  ;;  %v1379_v16 = vpop.permute.xlu2 %1378 }
 0x222   : > { %1294 = vst [vmem:[#allocation3 + $0x38] sm:$0xf0] %v1290_v15  ;;  %v2817_v15 = vld [vmem:[#allocation9] sm:$0xff] }
 0x223   : > { %1833 = vmatmul.msk.f32.vlgmr.msra.gmra.mxu0 %vm436_vm5, %v2817_v15  ;;  %1835 = vmatmul.msk.f32.vlgmr.msra.gmra.mxu1 %vm436_vm5, %v2817_v15 }
 0x225   : > { %1083 = vrot.lane.b32.xlu1 %v2629_v24, %s2956_s10 }
 0x226   : > { %1081 = vrot.lane.b32.xlu0 %v2627_v23, %s2956_s10  ;;  %s2103_s10 = scalar_lea.hbm %s2983_s28, 128 }
 0x227   : > { %v1309_v50 = vpop.permute.xlu1 %1308  ;;  %v1307_v49 = vpop.permute.xlu0 %1306  ;;  %1108 = vrot.lane.b32.xlu2 %v2632_v27, %s2957_s9  ;;  %p2105_p5 = scmp.lt.s32.totalorder %s2103_s10, %s2099_s18 }
 0x228   : > { %v1313_v18 = vsel %vm624_vm13, %v1309_v50, %v1311_v0  ;;  %v1312_v17 = vsel %vm624_vm13, %v1307_v49, %v1309_v50  ;;  %vm2968_vm13 = vcmask 359424  }
 0x229   : > { %1317 = vst [vmem:[#allocation3 + $0xb8] sm:$0xf] %v1313_v18  ;;  %v1401_v20 = vpop.permute.xlu2 %1400  ;;  %p2106_p11 = por %p2105_p5, %p2104_p2 }
 0x22a   : > { %1316 = vst [vmem:[#allocation3 + $0x78] sm:$0xf] %v1312_v17 }
 0x22b   : > { %p2107_p12 = pnand %p2106_p11, %p2102_p0 }
 0x22d   : > { %1106 = vrot.lane.b32.xlu1 %v2638_v33, %s2957_s9 }
 0x22e   : > { %1104 = vrot.lane.b32.xlu0 %v2636_v32, %s2957_s9 }
 0x22f   : > { %v1332_v24 = vpop.permute.xlu1 %1331 }
 0x230   : > { %v1336_v23 = vsel %vm648_vm14, %v1332_v24, %v1334_v8  ;;  %v1330_v21 = vpop.permute.xlu0 %1329 }
 0x231   : > { %1340 = vst [vmem:[#allocation3 + $0xb8] sm:$0xf0] %v1336_v23  ;;  %v1335_v27 = vsel %vm648_vm14, %v1330_v21, %v1332_v24  ;;  %v1424_v33 = vpop.permute.xlu2 %1423  ;;  %vm2969_vm14 = vmmov %vm2968_vm13 }
 0x232   : > { %1339 = vst [vmem:[#allocation3 + $0x78] sm:$0xf0] %v1335_v27 }
 0x237   : > { %v1354_v22 = vpop.permute.xlu1 %1353 }
 0x238   : > { %v1358_v1 = vsel %vm671_vm15, %v1354_v22, %v1356_v12  ;;  %v1352_v25 = vpop.permute.xlu0 %1351 }
 0x239   : > { %1362 = vst [vmem:[#allocation3 + $0x28] sm:$0xf] %v1358_v1  ;;  %v1357_v26 = vsel %vm671_vm15, %v1352_v25, %v1354_v22  ;;  %v1446_v31 = vpop.permute.xlu2 %1445  ;;  %vm2970_vm15 = vcmask 293888  }
 0x23a   : > { %1361 = vst [vmem:[#allocation3 + $0x40] sm:$0xf] %v1357_v26 }
 0x23f   : > { %v1377_v28 = vpop.permute.xlu1 %1376 }
 0x240   : > { %v1381_v32 = vsel %vm695_vm4, %v1377_v28, %v1379_v16  ;;  %v1375_v29 = vpop.permute.xlu0 %1374 }
 0x241   : > { %1385 = vst [vmem:[#allocation3 + $0x28] sm:$0xf0] %v1381_v32  ;;  %v1380_v30 = vsel %vm695_vm4, %v1375_v29, %v1377_v28  ;;  %v1469_v38 = vpop.permute.xlu2 %1468  ;;  %vm2962_vm4 = vcmask 441344  }
 0x242   : > { %1384 = vst [vmem:[#allocation3 + $0x40] sm:$0xf0] %v1380_v30  ;;  %vm2963_vm8 = vmmov %vm2962_vm4 }
 0x247   : > { %v1399_v34 = vpop.permute.xlu1 %1398 }
 0x248   : > { %v1403_v35 = vsel %vm2958_vm0, %v1399_v34, %v1401_v20  ;;  %v1397_v36 = vpop.permute.xlu0 %1396  ;;  %vm2971_vm0 = vmmov %vm2970_vm15 }
 0x249   : > { %1407 = vst [vmem:[#allocation3 + $0x60] sm:$0xf] %v1403_v35  ;;  %v1402_v37 = vsel %vm2959_vm1, %v1397_v36, %v1399_v34  ;;  %v1491_v59 = vpop.permute.xlu2 %1490  ;;  %vm2972_vm1 = vcmask 285696   ;;  %v1605_v34 = vld [vmem:[#allocation3 + $0x40] sm:$0xff]  ;;  %v1604_v35 = vld [vmem:[#allocation3 + $0xb8] sm:$0xff] }
 0x24a   : > { %1406 = vst [vmem:[#allocation3 + $0xc0] sm:$0xf] %v1402_v37  ;;  %v1603_v36 = vld [vmem:[#allocation3 + $0x78] sm:$0xff] }
 0x24f   : > { %v1422_v39 = vpop.permute.xlu1 %1421 }
 0x250   : > { %v1426_v40 = vsel %vm2960_vm2, %v1422_v39, %v1424_v33  ;;  %v1420_v19 = vpop.permute.xlu0 %1419  ;;  %vm2973_vm2 = vmmov %vm2972_vm1 }
 0x251   : > { %1430 = vst [vmem:[#allocation3 + $0x60] sm:$0xf0] %v1426_v40  ;;  %v1425_v41 = vsel %vm2961_vm7, %v1420_v19, %v1422_v39  ;;  %v1514_v56 = vpop.permute.xlu2 %1513  ;;  %vm2974_vm7 = vcmask 875520   ;;  %v1601_v40 = vld [vmem:[#allocation3 + $0x38] sm:$0xff] }
 0x252   : > { %1429 = vst [vmem:[#allocation3 + $0xc0] sm:$0xf0] %v1425_v41 }
 0x257   : > { %v1444_v42 = vpop.permute.xlu1 %1443 }
 0x258   : > { %v1448_v44 = vsel %vm2962_vm4, %v1444_v42, %v1446_v31  ;;  %v1442_v45 = vpop.permute.xlu0 %1441  ;;  %vm2975_vm4 = vmmov %vm2974_vm7  ;;  %v1608_v32 = vld [vmem:[#allocation3 + $0x60] sm:$0xff]  ;;  %v1606_v31 = vld [vmem:[#allocation3 + $0x28] sm:$0xff] }
 0x259   : > { %1452 = vst [vmem:[#allocation3 + $0xa8] sm:$0xf] %v1448_v44  ;;  %v1447_v46 = vsel %vm2963_vm8, %v1442_v45, %v1444_v42  ;;  %v1536_v62 = vpop.permute.xlu2 %1535  ;;  %v1607_v30 = vld [vmem:[#allocation3 + $0xc0] sm:$0xff]  ;;  %vm2978_vm8 = vcmask 949248   ;;  %v1600_v42 = vld [vmem:[#allocation3 + $0x58] sm:$0xff]  ;;  %v1599_v44 = vld [vmem:[#allocation3 + $0x8] sm:$0xff] }
 0x25a   : > { %1451 = vst [vmem:[#allocation3 + $0xd0] sm:$0xf] %v1447_v46  ;;  %v1598_v45 = vld [vmem:[#allocation3 + $0x88] sm:$0xff]  ;;  %v1597_v46 = vld [vmem:[#allocation3 + $0x80] sm:$0xff] }
 0x25f   : > { %v1467_v48 = vpop.permute.xlu1 %1466 }
 0x260   : > { %v1471_v52 = vsel %vm2964_vm9, %v1467_v48, %v1469_v38  ;;  %v1465_v53 = vpop.permute.xlu0 %1464  ;;  %v1602_v38 = vld [vmem:[#allocation3 + $0x90] sm:$0xff]  ;;  %vm2979_vm9 = vmmov %vm2978_vm8 }
 0x261   : > { %1475 = vst [vmem:[#allocation3 + $0xa8] sm:$0xf0] %v1471_v52  ;;  %v1470_v54 = vsel %vm2965_vm10, %v1465_v53, %v1467_v48  ;;  %v1559_v4 = vpop.permute.xlu2 %1558 }
 0x262   : > { %1474 = vst [vmem:[#allocation3 + $0xd0] sm:$0xf0] %v1470_v54 }
 0x267   : > { %v1489_v57 = vpop.permute.xlu1 %1488 }
 0x268   : > { %v1493_v58 = vsel %vm2966_vm11, %v1489_v57, %v1491_v59  ;;  %v1487_v60 = vpop.permute.xlu0 %1486  ;;  %v1610_v1 = vld [vmem:[#allocation3 + $0xa8] sm:$0xff] }
 0x269   : > { %1497 = vst [vmem:[#allocation3 + $0xa0] sm:$0xf] %v1493_v58  ;;  %v1492_v61 = vsel %vm2967_vm12, %v1487_v60, %v1489_v57  ;;  %v1581_v10 = vpop.permute.xlu2 %1580  ;;  %v1609_v26 = vld [vmem:[#allocation3 + $0xd0] sm:$0xff]  ;;  %v1591_v57 = vld [vmem:[#allocation3 + $0xd8] sm:$0xff]  ;;  %v1590_v58 = vld [vmem:[#allocation3] sm:$0xff] }
 0x26a   : > { %1496 = vst [vmem:[#allocation3 + $0x98] sm:$0xf] %v1492_v61  ;;  %v1589_v60 = vld [vmem:[#allocation3 + $0xb0] sm:$0xff] }
 0x26f   : > { %v1512_v0 = vpop.permute.xlu1 %1511 }
 0x270   : > { %v1516_v63 = vsel %vm2968_vm13, %v1512_v0, %v1514_v56  ;;  %v1510_v2 = vpop.permute.xlu0 %1509  ;;  %v1592_v56 = vld [vmem:[#allocation3 + $0x18] sm:$0xff] }
 0x271   : > { %1520 = vst [vmem:[#allocation3 + $0xa0] sm:$0xf0] %v1516_v63  ;;  %v1515_v3 = vsel %vm2969_vm14, %v1510_v2, %v1512_v0  ;;  %v1154_v43 = vpop.permute.xlu2 %1153 }
 0x272   : > { %1519 = vst [vmem:[#allocation3 + $0x98] sm:$0xf0] %v1515_v3 }
 0x277   : > { %v1534_v5 = vpop.permute.xlu1 %1533 }
 0x278   : > { %v1538_v6 = vsel %vm2970_vm15, %v1534_v5, %v1536_v62  ;;  %v1532_v7 = vpop.permute.xlu0 %1531  ;;  %v1612_v27 = vld [vmem:[#allocation3 + $0xa0] sm:$0xff] }
 0x279   : > { %1542 = vst [vmem:[#allocation3 + $0x10] sm:$0xf] %v1538_v6  ;;  %v1537_v8 = vsel %vm2971_vm0, %v1532_v7, %v1534_v5  ;;  %v1086_v21 = vpop.permute.xlu2 %1085  ;;  %v1611_v22 = vld [vmem:[#allocation3 + $0x98] sm:$0xff] }
 0x27a   : > { %1541 = vst [vmem:[#allocation3 + $0x20] sm:$0xf] %v1537_v8 }
 0x27f   : > { %v1557_v9 = vpop.permute.xlu1 %1556 }
 0x280   : > { %v1561_v47 = vsel %vm2972_vm1, %v1557_v9, %v1559_v4  ;;  %v1555_v51 = vpop.permute.xlu0 %1554 }
 0x281   : > { %1565 = vst [vmem:[#allocation3 + $0x10] sm:$0xf0] %v1561_v47  ;;  %v1560_v55 = vsel %vm2973_vm2, %v1555_v51, %v1557_v9  ;;  %v1109_v37 = vpop.permute.xlu2 %1108 }
 0x282   : > { %1564 = vst [vmem:[#allocation3 + $0x20] sm:$0xf0] %v1560_v55 }
 0x287   : > { %v1579_v11 = vpop.permute.xlu1 %1578 }
 0x288   : > { %v1583_v12 = vsel %vm906_vm3, %v1579_v11, %v1581_v10  ;;  %v1577_v13 = vpop.permute.xlu0 %1576  ;;  %v1614_v20 = vld [vmem:[#allocation3 + $0x10] sm:$0xff] }
 0x289   : > { %1587 = vst [vmem:[#allocation3 + $0x70] sm:$0xf] %v1583_v12  ;;  %v1582_v14 = vsel %vm906_vm3, %v1577_v13, %v1579_v11  ;;  %v1613_v23 = vld [vmem:[#allocation3 + $0x20] sm:$0xff]  ;;  %vm2976_vm3 = vcmask 957440  }
 0x28a   : > { %1586 = vst [vmem:[#allocation3 + $0xc8] sm:$0xf] %v1582_v14 }
 0x28f   : > { %v1152_v16 = vpop.permute.xlu1 %1151 }
 0x290   : > { %v1156_v50 = vsel %vm2974_vm7, %v1152_v16, %v1154_v43  ;;  %v1150_v49 = vpop.permute.xlu0 %1149  ;;  %v1616_v18 = vld [vmem:[#allocation3 + $0x70] sm:$0xf] }
 0x291   : > { %1160 = vst [vmem:[#allocation3 + $0x48] sm:$0xf0] %v1156_v50  ;;  %v1155_v17 = vsel %vm2975_vm4, %v1150_v49, %v1152_v16  ;;  %v1615_v24 = vld [vmem:[#allocation3 + $0xc8] sm:$0xf]  ;;  %1838 = vmatpush.msk.msra.mxu3 %vm945_vm6, %v1616_v18 }
 0x292   : > { %1159 = vst [vmem:[#allocation3 + $0x30] sm:$0xf0] %v1155_v17  ;;  %1836 = vmatpush.msk.msra.mxu2 %vm945_vm6, %v1615_v24  ;;  %vm2977_vm6 = vmmov %vm2976_vm3 }
 0x293   : > { %1649 = vmatpush.msra.mxu3 %v1614_v20 }
 0x294   : > { %1629 = vmatpush.msra.mxu2 %v1613_v23 }
 0x295   : > { %1650 = vmatpush.msra.mxu3 %v1612_v27 }
 0x296   : > { %1630 = vmatpush.msra.mxu2 %v1611_v22 }
 0x297   : > { %1651 = vmatpush.msra.mxu3 %v1610_v1  ;;  %v1084_v25 = vpop.permute.xlu1 %1083 }
 0x298   : > { %v1088_v33 = vsel %vm2976_vm3, %v1084_v25, %v1086_v21  ;;  %1631 = vmatpush.msra.mxu2 %v1609_v26  ;;  %v1082_v28 = vpop.permute.xlu0 %1081  ;;  %v1596_v48 = vld [vmem:[#allocation3 + $0x48] sm:$0xff] }
 0x299   : > { %1092 = vst [vmem:[#allocation3 + $0x68] sm:$0xf] %v1088_v33  ;;  %v1087_v29 = vsel %vm2977_vm6, %v1082_v28, %v1084_v25  ;;  %1652 = vmatpush.msra.mxu3 %v1608_v32  ;;  %v1595_v52 = vld [vmem:[#allocation3 + $0x30] sm:$0xff] }
 0x29a   : > { %1091 = vst [vmem:[#allocation3 + $0x50] sm:$0xf] %v1087_v29  ;;  %1632 = vmatpush.msra.mxu2 %v1607_v30 }
 0x29b   : > { %1653 = vmatpush.msra.mxu3 %v1606_v31 }
 0x29c   : > { %1633 = vmatpush.msra.mxu2 %v1605_v34 }
 0x29d   : > { %1654 = vmatpush.msra.mxu3 %v1604_v35 }
 0x29e   : > { %1634 = vmatpush.msra.mxu2 %v1603_v36 }
 0x29f   : > { %1655 = vmatpush.msra.mxu3 %v1602_v38  ;;  %v1107_v39 = vpop.permute.xlu1 %1106 }
 0x2a0   : > { %v1111_v19 = vsel %vm2978_vm8, %v1107_v39, %v1109_v37  ;;  %1635 = vmatpush.msra.mxu2 %v1601_v40  ;;  %v1105_v41 = vpop.permute.xlu0 %1104  ;;  %v969_v61 = vpop.f32.mrf.mxu0 }
 0x2a1   : > { %1115 = vst [vmem:[#allocation3 + $0x68] sm:$0xf0] %v1111_v19  ;;  %v1110_v59 = vsel %vm2979_vm9, %v1105_v41, %v1107_v39  ;;  %1656 = vmatpush.msra.mxu3 %v1600_v42  ;;  %v989_v62 = vpop.f32.mrf.mxu1 }
 0x2a2   : > { %1114 = vst [vmem:[#allocation3 + $0x50] sm:$0xf0] %v1110_v59  ;;  %1636 = vmatpush.msra.mxu2 %v1599_v44 }
 0x2a3   : > { %1657 = vmatpush.msra.mxu3 %v1598_v45  ;;  %992 = vst [vmem:[%s277_s12] sm:$0xff] %v969_v61 }
 0x2a4   : > { %1637 = vmatpush.msra.mxu2 %v1597_v46  ;;  %993 = vst [vmem:[%s277_s12 + $0x8] sm:$0xff] %v989_v62 }
 0x2a5   : > { %1658 = vmatpush.msra.mxu3 %v1596_v48 }
 0x2a6   : > { %1638 = vmatpush.msra.mxu2 %v1595_v52 }
 0x2a8   : > { %v1594_v53 = vld [vmem:[#allocation3 + $0x68] sm:$0xff] }
 0x2a9   : > { %v1593_v54 = vld [vmem:[#allocation3 + $0x50] sm:$0xff]  ;;  %1659 = vmatpush.msra.mxu3 %v1594_v53 }
 0x2aa   : > { %1639 = vmatpush.msra.mxu2 %v1593_v54 }
 0x2ab   : > { %1660 = vmatpush.msra.mxu3 %v1592_v56 }
 0x2ac   : > { %1640 = vmatpush.msra.mxu2 %v1591_v57 }
 0x2ad   : > { %1661 = vmatpush.msra.mxu3 %v1590_v58 }
 0x2ae   : > { %1641 = vmatpush.msra.mxu2 %v1589_v60  ;;  %1839 = vmatmul.msk.f32.vlgmr.msra.gmra.mxu3 %vm436_vm5, %v2817_v15 }
 0x2af   : > { %1837 = vmatmul.msk.f32.vlgmr.msra.gmra.mxu2 %vm436_vm5, %v2817_v15 }
 0x331   : > { %v1663_v0 = vpop.f32.mrf.mxu3 }
 0x332   : > { %v1643_v63 = vpop.f32.mrf.mxu2  ;;  %1667 = vst [vmem:[%s277_s12 + $0x18] sm:$0xff] %v1663_v0 }
 0x333   : > { %1666 = vst [vmem:[%s277_s12 + $0x10] sm:$0xff] %v1643_v63 }
 0x334   : > { %2110 = shalt.err (!%p2107_p12)
}
 0x335   : > { %1858 = dma.vmem_to_hbm [thread:$0]  (%p2389_p4), %s1685_s6, 512, %s1687_s27, %s1669_s8  }
 0x336 PF: > { %s2984_s24 = sld [smem:[#allocation15_spill]]  ;;  %p1870_p8 = scmp.ge.s32.totalorder %s2215_s22, 2 }
 0x338   : > { %p1865_p9 = pnand %p1870_p8, %p2400_p3 }
 0x33a   : > { %p1866_p1 = pneg %p1865_p9 }
 0x33c   : > { %s1698_s12 = sand.u32 1, %s2984_s24  }
 0x33d   : > { %s1699_s26 = scalar_lea.sflag [#allocation6], %s1698_s12 }
 0x33e   : > { %2168 = dma.done.wait (%p1866_p1), %s1699_s26, 512  }
 0x33f   : > { %2170 = vsyncadd (%p1866_p1), %s1699_s26, 4294966784  ;;  %s22_s22 = sadd.s32 1, %s2215_s22   ;;  %s2986_s3 = sld [smem:[#allocation21_spill]] }
 0x340   : > { %p19_p7 = scmp.ge.s32.totalorder %s22_s22, 6   ;;  %s2987_s2 = sld [smem:[#allocation16_spill]] }
 0x341   : > { %s2988_s17 = sld [smem:[#allocation20_spill]]  ;;  %s2991_s12 = smov %s2179_s13 }
 0x342   : > { %s2989_s25 = sld [smem:[#allocation18_spill]]  ;;  %s2992_s13 = smov %s2183_s14 }
 0x343   : > { %s2990_s30 = sld [smem:[#allocation19_spill]]  ;;  %s2994_s15 = smov %s2191_s16 }
 0x344   : > { %s2996_s18 = smov %s2207_s20  ;;  %s2997_s19 = smov %s2211_s21 }
 0x345   : > { %s2993_s14 = smov %s2986_s3  ;;  %21 = sbr.rel (!%p19_p7) target bundleno = 14 (0xe), region = 172 }
 0x346   : > { %s2995_s16 = smov %s2987_s2 }
 0x348   : > { %s2998_s20 = smov %s2989_s25 }
 0x349   : > { %s2999_s21 = smov %s2990_s30 }
 0x34a   :  { %1705 = vsyncpa [#allocation5], 1 }
 0x34b   :  { %1707 = vsyncpa [#allocation5 + $0x1], 1 }
 0x34c   :  { %1708 = vsyncpa [#allocation8], 1 }
 0x34d   :  { %1710 = vsyncpa [#allocation8 + $0x1], 1 }
 0x34e   :  { %1711 = vsyncpa [#allocation6], 1 }
 0x34f   :  { %1713 = vsyncpa [#allocation6 + $0x1], 1 }

</bundles_post_ra>
